<compile_context>
chip_gen: v6e
topology: v6e:2x2x1
jax: 0.10.0
libtpu: 0.0.40
codegen_flags: <defaults>
</compile_context>

<pallas_src>
import jax
import jax.numpy as jnp
from jax.experimental import pallas as pl
from jax.experimental.pallas import tpu as pltpu


# ------------------------------- geometry -----------------------------------
K1, K2 = 3, 5
C_IN, C1, C2 = 3, 32, 64
H_IN = W_IN = 7
HO1 = WO1 = H_IN - K1 + 1          # 5
S1 = HO1 * WO1                     # 25 conv1 output positions == conv2 patch rows
KP1 = K1 * K1 * C_IN               # 27 = im2col width of conv1
KP1_AUG = KP1 + 1                  # +1 ones-column so conv1 bias folds into w1
KP1_PAD = 32                       # pad 28 -> 32 lanes (4x less input DMA than 128)
C_PAD = 128                        # channel / class dims padded to 128 lanes
TILE_B_MAX = 128                   # batch tile cap (f32 accumulator = 16 vregs)


def _round_up(a, b):
    return (a + b - 1) // b * b


# ------------------------- fused network kernel -----------------------------
def _fused_net_kernel(p_ref, w1_ref, w2_ref, b2_ref, wf_ref, bf_ref, o_ref):
    tb = o_ref.shape[0]
    w1 = w1_ref[...]                                   # (32, 128) bf16, tiny

    # conv1 + conv2 fused per conv1 spatial position: h1 is never materialized
    # in VMEM.  Per position s: im2col matmul (bias folded via the ones-column
    # row of w1) -> ReLU -> accumulate the conv2 contribution in f32.  Padded
    # lanes of h1 are exactly zero (zero w1 columns), so w2's zero-padded rows
    # keep the contraction exact.
    acc = jnp.zeros((tb, C_PAD), jnp.float32)
    for s in range(S1):                                # static unroll (25 steps)
        h1 = jnp.dot(p_ref[s], w1, preferred_element_type=jnp.float32)
        h1 = jnp.maximum(h1, 0.0).astype(jnp.bfloat16)
        acc = acc + jnp.dot(h1, w2_ref[s], preferred_element_type=jnp.float32)

    h2 = jnp.maximum(acc + b2_ref[...], 0.0).astype(jnp.bfloat16)

    # fully-connected epilogue; 128-lane-dense bf16 store.
    logits = jnp.dot(h2, wf_ref[...], preferred_element_type=jnp.float32)
    o_ref[...] = (logits + bf_ref[...]).astype(o_ref.dtype)


# ------------------------------ forward pass --------------------------------
def decomposed_conv_net_forward(x_nchw, params, num_classes=2):
    w1p, w2p, b2p, wfp, bfp = params
    n = x_nchw.shape[0]
    x = jnp.transpose(x_nchw, (0, 2, 3, 1)).astype(jnp.float32)   # NCHW -> NHWC

    # im2col for conv1 (data movement only) + a constant ones-column so the
    # conv1 bias rides the same MXU matmul.
    cols = [x[:, kh:kh + HO1, kw:kw + WO1, :]
            for kh in range(K1) for kw in range(K1)]
    patches = jnp.stack(cols, axis=3).reshape(n, S1, KP1)
    patches = jnp.concatenate(
        [patches, jnp.ones((n, S1, 1), patches.dtype)], axis=-1)   # (n, 25, 28)

    # Batch tile: as large as possible (<=128) while keeping >=2 grid steps for
    # megacore whenever the batch allows it.
    tile_b = min(TILE_B_MAX, max(8, _round_up((n + 1) // 2, 8)))
    n_pad = _round_up(n, tile_b)

    # Ship (S1, n_pad, 32) so each spatial slice is a contiguous lane-dense tile.
    patches = jnp.transpose(patches, (1, 0, 2))                    # (25, n, 28)
    patches = jnp.pad(patches, ((0, 0), (0, n_pad - n),
                                (0, KP1_PAD - KP1_AUG))).astype(jnp.bfloat16)

    flops = 2 * n_pad * (S1 * (KP1_PAD * C_PAD + C_PAD * C_PAD)   # conv1 + conv2
                         + C_PAD * C_PAD)                          # fc
    bytes_accessed = (patches.size * 2
                      + (w1p.size + w2p.size + wfp.size) * 2
                      + (b2p.size + bfp.size) * 4
                      + n_pad * C_PAD * 2)

    out = pl.pallas_call(
        _fused_net_kernel,
        out_shape=jax.ShapeDtypeStruct((n_pad, C_PAD), jnp.bfloat16),
        grid_spec=pltpu.PrefetchScalarGridSpec(
            num_scalar_prefetch=0,
            grid=(n_pad // tile_b,),
            in_specs=[
                pl.BlockSpec((S1, tile_b, KP1_PAD), lambda i: (0, i, 0)),
                pl.BlockSpec((KP1_PAD, C_PAD), lambda i: (0, 0)),
                pl.BlockSpec((S1, C_PAD, C_PAD), lambda i: (0, 0, 0)),
                pl.BlockSpec((1, C_PAD), lambda i: (0, 0)),
                pl.BlockSpec((C_PAD, C_PAD), lambda i: (0, 0)),
                pl.BlockSpec((1, C_PAD), lambda i: (0, 0)),
            ],
            out_specs=pl.BlockSpec((tile_b, C_PAD), lambda i: (i, 0)),
        ),
        compiler_params=pltpu.CompilerParams(
            dimension_semantics=("parallel",)),
        cost_estimate=pl.CostEstimate(flops=flops, transcendentals=0,
                                      bytes_accessed=bytes_accessed),
    )(patches, w1p, w2p, b2p, wfp, bfp)

    # Padded batch rows carry garbage (ReLU of biases) -> slice them off here.
    return out[:n, :num_classes].astype(jnp.float32)


# ----------------------- parameter construction -----------------------------
def init_params(key, decomposition_rank=3, num_classes=2):
    keys = jax.random.split(key, 10)

    def tucker_conv(ks, cin, cout, k):
        core = 0.1 * jax.random.normal(
            ks[0], (decomposition_rank, decomposition_rank, k, k), jnp.float32)
        u_out = 0.1 * jax.random.normal(ks[1], (cout, decomposition_rank), jnp.float32)
        u_in = 0.1 * jax.random.normal(ks[2], (cin, decomposition_rank), jnp.float32)
        bias = 0.1 * jax.random.normal(ks[3], (cout,), jnp.float32)
        # Reconstruct dense conv kernel OIHW from Tucker factors, then HWIO.
        w_oihw = jnp.einsum('rskl,or,is->oikl', core, u_out, u_in)
        w_hwio = jnp.transpose(w_oihw, (2, 3, 1, 0))          # (k, k, cin, cout)
        return w_hwio, bias

    w1_hwio, b1 = tucker_conv(keys[0:4], C_IN, C1, K1)
    w2_hwio, b2 = tucker_conv(keys[4:8], C1, C2, K2)
    wfc = 0.1 * jax.random.normal(keys[8], (num_classes, C2), jnp.float32)
    bfc = 0.1 * jax.random.normal(keys[9], (num_classes,), jnp.float32)

    # Padded, lane-dense bf16 copies laid out for the fused Pallas kernel.
    # conv1 bias is folded into w1 row KP1 (matched by the ones-column in the
    # im2col patches).
    w1p = (jnp.zeros((KP1_PAD, C_PAD), jnp.float32)
           .at[:KP1, :C1].set(w1_hwio.reshape(KP1, C1))
           .at[KP1, :C1].set(b1)
           .astype(jnp.bfloat16))
    w2p = (jnp.zeros((S1, C_PAD, C_PAD), jnp.float32)
           .at[:, :C1, :C2].set(w2_hwio.reshape(S1, C1, C2))
           .astype(jnp.bfloat16))
    b2p = jnp.zeros((1, C_PAD), jnp.float32).at[0, :C2].set(b2)
    wfp = (jnp.zeros((C_PAD, C_PAD), jnp.float32)
           .at[:C2, :num_classes].set(jnp.transpose(wfc))
           .astype(jnp.bfloat16))
    bfp = jnp.zeros((1, C_PAD), jnp.float32).at[0, :num_classes].set(bfc)

    pallas_params = (w1p, w2p, b2p, wfp, bfp)
    dense_params = (w1_hwio, b1, w2_hwio, b2, wfc, bfc)
    return pallas_params, dense_params


# ------------------------- pure-JAX f32 reference ---------------------------
def _reference_forward(x_nchw, dense_params):
    w1_hwio, b1, w2_hwio, b2, wfc, bfc = dense_params
    x = jnp.transpose(x_nchw, (0, 2, 3, 1)).astype(jnp.float32)
    dn = ('NHWC', 'HWIO', 'NHWC')
    h1 = jnp.maximum(jax.lax.conv_general_dilated(
        x, w1_hwio, (1, 1), 'VALID', dimension_numbers=dn) + b1, 0.0)
    h2 = jnp.maximum(jax.lax.conv_general_dilated(
        h1, w2_hwio, (1, 1), 'VALID', dimension_numbers=dn) + b2, 0.0)
    flat = jnp.transpose(h2, (0, 3, 1, 2)).reshape(x.shape[0], -1)   # (N, 64)
    return flat @ jnp.transpose(wfc) + bfc


if __name__ == "__main__":
    key = jax.random.PRNGKey(0)
    k_params, k_input = jax.random.split(key)

    pallas_params, dense_params = init_params(k_params, decomposition_rank=3,
                                              num_classes=2)

    # NCHW input, spatial 7x7 so that (7-3+1)-5+1 = 1 and the flatten feeds
    # Linear(in_features=64) exactly.
    x = jax.random.normal(k_input, (2, 3, 7, 7), jnp.float32)

    fwd = jax.jit(decomposed_conv_net_forward)
    out = jax.block_until_ready(fwd(x, pallas_params))
    ref = jax.block_until_ready(_reference_forward(x, dense_params))

    assert out.shape == (2, 2) and out.dtype == jnp.float32
    assert jnp.allclose(out, ref, atol=2e-2, rtol=5e-2), (out, ref)
    print("KERNEL_OK")
</pallas_src>

<mosaic_0001>
module attributes {stable_mosaic.version = 11 : i64} {
  func.func @_fused_net_kernel(%arg0: i32, %arg1: memref<25x8x32xbf16, #tpu.memory_space<vmem>>, %arg2: memref<32x128xbf16, #tpu.memory_space<vmem>>, %arg3: memref<25x128x128xbf16, #tpu.memory_space<vmem>>, %arg4: memref<1x128xf32, #tpu.memory_space<vmem>>, %arg5: memref<128x128xbf16, #tpu.memory_space<vmem>>, %arg6: memref<1x128xf32, #tpu.memory_space<vmem>>, %arg7: memref<8x128xbf16, #tpu.memory_space<vmem>>) attributes {dimension_semantics = [#tpu.dimension_semantics<parallel>], iteration_bounds = array<i64: 1>, scalar_prefetch = 0 : i64, scratch_operands = 0 : i64, tpu.core_type = #tpu.core_type<tc>, window_params = [{transform_indices = @transform_0, window_bounds = array<i64: 25, 8, 32>}, {pipeline_mode = #tpu.pipeline_mode<synchronous>, transform_indices = @transform_1, window_bounds = array<i64: 32, 128>}, {pipeline_mode = #tpu.pipeline_mode<synchronous>, transform_indices = @transform_2, window_bounds = array<i64: 25, 128, 128>}, {pipeline_mode = #tpu.pipeline_mode<synchronous>, transform_indices = @transform_3, window_bounds = array<i64: 1, 128>}, {pipeline_mode = #tpu.pipeline_mode<synchronous>, transform_indices = @transform_4, window_bounds = array<i64: 128, 128>}, {pipeline_mode = #tpu.pipeline_mode<synchronous>, transform_indices = @transform_5, window_bounds = array<i64: 1, 128>}, {transform_indices = @transform_6, window_bounds = array<i64: 8, 128>}]} {
    %c0 = arith.constant 0 : index
    %c0_0 = arith.constant 0 : index
    %0 = vector.load %arg2[%c0, %c0_0] : memref<32x128xbf16, #tpu.memory_space<vmem>>, vector<32x128xbf16>
    %cst = arith.constant 0.000000e+00 : f32
    %1 = vector.broadcast %cst : f32 to vector<8x128xf32>
    %c0_1 = arith.constant 0 : index
    %c0_2 = arith.constant 0 : index
    %c0_3 = arith.constant 0 : index
    %2 = vector.load %arg1[%c0_1, %c0_2, %c0_3] : memref<25x8x32xbf16, #tpu.memory_space<vmem>>, vector<1x8x32xbf16>
    %3 = vector.shape_cast %2 : vector<1x8x32xbf16> to vector<8x32xbf16>
    %cst_4 = arith.constant dense<0.000000e+00> : vector<8x128xf32>
    %4 = tpu.matmul %3, %0, %cst_4 {dimension_numbers = #tpu.dot_dimension_numbers<[1], [0], [0], [1], [0, 0, 1, 1], [], []>} : vector<8x32xbf16>, vector<32x128xbf16>, vector<8x128xf32> -> vector<8x128xf32>
    %cst_5 = arith.constant 0.000000e+00 : f32
    %5 = vector.broadcast %cst_5 : f32 to vector<8x128xf32>
    %6 = arith.maximumf %4, %5 : vector<8x128xf32>
    %7 = arith.truncf %6 : vector<8x128xf32> to vector<8x128xbf16>
    %c0_6 = arith.constant 0 : index
    %c0_7 = arith.constant 0 : index
    %c0_8 = arith.constant 0 : index
    %8 = vector.load %arg3[%c0_6, %c0_7, %c0_8] : memref<25x128x128xbf16, #tpu.memory_space<vmem>>, vector<1x128x128xbf16>
    %9 = vector.shape_cast %8 : vector<1x128x128xbf16> to vector<128x128xbf16>
    %cst_9 = arith.constant dense<0.000000e+00> : vector<8x128xf32>
    %10 = tpu.matmul %7, %9, %cst_9 {dimension_numbers = #tpu.dot_dimension_numbers<[1], [0], [0], [1], [0, 0, 1, 1], [], []>} : vector<8x128xbf16>, vector<128x128xbf16>, vector<8x128xf32> -> vector<8x128xf32>
    %11 = arith.addf %1, %10 : vector<8x128xf32>
    %c1 = arith.constant 1 : index
    %c0_10 = arith.constant 0 : index
    %c0_11 = arith.constant 0 : index
    %12 = vector.load %arg1[%c1, %c0_10, %c0_11] : memref<25x8x32xbf16, #tpu.memory_space<vmem>>, vector<1x8x32xbf16>
    %13 = vector.shape_cast %12 : vector<1x8x32xbf16> to vector<8x32xbf16>
    %cst_12 = arith.constant dense<0.000000e+00> : vector<8x128xf32>
    %14 = tpu.matmul %13, %0, %cst_12 {dimension_numbers = #tpu.dot_dimension_numbers<[1], [0], [0], [1], [0, 0, 1, 1], [], []>} : vector<8x32xbf16>, vector<32x128xbf16>, vector<8x128xf32> -> vector<8x128xf32>
    %cst_13 = arith.constant 0.000000e+00 : f32
    %15 = vector.broadcast %cst_13 : f32 to vector<8x128xf32>
    %16 = arith.maximumf %14, %15 : vector<8x128xf32>
    %17 = arith.truncf %16 : vector<8x128xf32> to vector<8x128xbf16>
    %c1_14 = arith.constant 1 : index
    %c0_15 = arith.constant 0 : index
    %c0_16 = arith.constant 0 : index
    %18 = vector.load %arg3[%c1_14, %c0_15, %c0_16] : memref<25x128x128xbf16, #tpu.memory_space<vmem>>, vector<1x128x128xbf16>
    %19 = vector.shape_cast %18 : vector<1x128x128xbf16> to vector<128x128xbf16>
    %cst_17 = arith.constant dense<0.000000e+00> : vector<8x128xf32>
    %20 = tpu.matmul %17, %19, %cst_17 {dimension_numbers = #tpu.dot_dimension_numbers<[1], [0], [0], [1], [0, 0, 1, 1], [], []>} : vector<8x128xbf16>, vector<128x128xbf16>, vector<8x128xf32> -> vector<8x128xf32>
    %21 = arith.addf %11, %20 : vector<8x128xf32>
    %c2 = arith.constant 2 : index
    %c0_18 = arith.constant 0 : index
    %c0_19 = arith.constant 0 : index
    %22 = vector.load %arg1[%c2, %c0_18, %c0_19] : memref<25x8x32xbf16, #tpu.memory_space<vmem>>, vector<1x8x32xbf16>
    %23 = vector.shape_cast %22 : vector<1x8x32xbf16> to vector<8x32xbf16>
    %cst_20 = arith.constant dense<0.000000e+00> : vector<8x128xf32>
    %24 = tpu.matmul %23, %0, %cst_20 {dimension_numbers = #tpu.dot_dimension_numbers<[1], [0], [0], [1], [0, 0, 1, 1], [], []>} : vector<8x32xbf16>, vector<32x128xbf16>, vector<8x128xf32> -> vector<8x128xf32>
    %cst_21 = arith.constant 0.000000e+00 : f32
    %25 = vector.broadcast %cst_21 : f32 to vector<8x128xf32>
    %26 = arith.maximumf %24, %25 : vector<8x128xf32>
    %27 = arith.truncf %26 : vector<8x128xf32> to vector<8x128xbf16>
    %c2_22 = arith.constant 2 : index
    %c0_23 = arith.constant 0 : index
    %c0_24 = arith.constant 0 : index
    %28 = vector.load %arg3[%c2_22, %c0_23, %c0_24] : memref<25x128x128xbf16, #tpu.memory_space<vmem>>, vector<1x128x128xbf16>
    %29 = vector.shape_cast %28 : vector<1x128x128xbf16> to vector<128x128xbf16>
    %cst_25 = arith.constant dense<0.000000e+00> : vector<8x128xf32>
    %30 = tpu.matmul %27, %29, %cst_25 {dimension_numbers = #tpu.dot_dimension_numbers<[1], [0], [0], [1], [0, 0, 1, 1], [], []>} : vector<8x128xbf16>, vector<128x128xbf16>, vector<8x128xf32> -> vector<8x128xf32>
    %31 = arith.addf %21, %30 : vector<8x128xf32>
    %c3 = arith.constant 3 : index
    %c0_26 = arith.constant 0 : index
    %c0_27 = arith.constant 0 : index
    %32 = vector.load %arg1[%c3, %c0_26, %c0_27] : memref<25x8x32xbf16, #tpu.memory_space<vmem>>, vector<1x8x32xbf16>
    %33 = vector.shape_cast %32 : vector<1x8x32xbf16> to vector<8x32xbf16>
    %cst_28 = arith.constant dense<0.000000e+00> : vector<8x128xf32>
    %34 = tpu.matmul %33, %0, %cst_28 {dimension_numbers = #tpu.dot_dimension_numbers<[1], [0], [0], [1], [0, 0, 1, 1], [], []>} : vector<8x32xbf16>, vector<32x128xbf16>, vector<8x128xf32> -> vector<8x128xf32>
    %cst_29 = arith.constant 0.000000e+00 : f32
    %35 = vector.broadcast %cst_29 : f32 to vector<8x128xf32>
    %36 = arith.maximumf %34, %35 : vector<8x128xf32>
    %37 = arith.truncf %36 : vector<8x128xf32> to vector<8x128xbf16>
    %c3_30 = arith.constant 3 : index
    %c0_31 = arith.constant 0 : index
    %c0_32 = arith.constant 0 : index
    %38 = vector.load %arg3[%c3_30, %c0_31, %c0_32] : memref<25x128x128xbf16, #tpu.memory_space<vmem>>, vector<1x128x128xbf16>
    %39 = vector.shape_cast %38 : vector<1x128x128xbf16> to vector<128x128xbf16>
    %cst_33 = arith.constant dense<0.000000e+00> : vector<8x128xf32>
    %40 = tpu.matmul %37, %39, %cst_33 {dimension_numbers = #tpu.dot_dimension_numbers<[1], [0], [0], [1], [0, 0, 1, 1], [], []>} : vector<8x128xbf16>, vector<128x128xbf16>, vector<8x128xf32> -> vector<8x128xf32>
    %41 = arith.addf %31, %40 : vector<8x128xf32>
    %c4 = arith.constant 4 : index
    %c0_34 = arith.constant 0 : index
    %c0_35 = arith.constant 0 : index
    %42 = vector.load %arg1[%c4, %c0_34, %c0_35] : memref<25x8x32xbf16, #tpu.memory_space<vmem>>, vector<1x8x32xbf16>
    %43 = vector.shape_cast %42 : vector<1x8x32xbf16> to vector<8x32xbf16>
    %cst_36 = arith.constant dense<0.000000e+00> : vector<8x128xf32>
    %44 = tpu.matmul %43, %0, %cst_36 {dimension_numbers = #tpu.dot_dimension_numbers<[1], [0], [0], [1], [0, 0, 1, 1], [], []>} : vector<8x32xbf16>, vector<32x128xbf16>, vector<8x128xf32> -> vector<8x128xf32>
    %cst_37 = arith.constant 0.000000e+00 : f32
    %45 = vector.broadcast %cst_37 : f32 to vector<8x128xf32>
    %46 = arith.maximumf %44, %45 : vector<8x128xf32>
    %47 = arith.truncf %46 : vector<8x128xf32> to vector<8x128xbf16>
    %c4_38 = arith.constant 4 : index
    %c0_39 = arith.constant 0 : index
    %c0_40 = arith.constant 0 : index
    %48 = vector.load %arg3[%c4_38, %c0_39, %c0_40] : memref<25x128x128xbf16, #tpu.memory_space<vmem>>, vector<1x128x128xbf16>
    %49 = vector.shape_cast %48 : vector<1x128x128xbf16> to vector<128x128xbf16>
    %cst_41 = arith.constant dense<0.000000e+00> : vector<8x128xf32>
    %50 = tpu.matmul %47, %49, %cst_41 {dimension_numbers = #tpu.dot_dimension_numbers<[1], [0], [0], [1], [0, 0, 1, 1], [], []>} : vector<8x128xbf16>, vector<128x128xbf16>, vector<8x128xf32> -> vector<8x128xf32>
    %51 = arith.addf %41, %50 : vector<8x128xf32>
    %c5 = arith.constant 5 : index
    %c0_42 = arith.constant 0 : index
    %c0_43 = arith.constant 0 : index
    %52 = vector.load %arg1[%c5, %c0_42, %c0_43] : memref<25x8x32xbf16, #tpu.memory_space<vmem>>, vector<1x8x32xbf16>
    %53 = vector.shape_cast %52 : vector<1x8x32xbf16> to vector<8x32xbf16>
    %cst_44 = arith.constant dense<0.000000e+00> : vector<8x128xf32>
    %54 = tpu.matmul %53, %0, %cst_44 {dimension_numbers = #tpu.dot_dimension_numbers<[1], [0], [0], [1], [0, 0, 1, 1], [], []>} : vector<8x32xbf16>, vector<32x128xbf16>, vector<8x128xf32> -> vector<8x128xf32>
    %cst_45 = arith.constant 0.000000e+00 : f32
    %55 = vector.broadcast %cst_45 : f32 to vector<8x128xf32>
    %56 = arith.maximumf %54, %55 : vector<8x128xf32>
    %57 = arith.truncf %56 : vector<8x128xf32> to vector<8x128xbf16>
    %c5_46 = arith.constant 5 : index
    %c0_47 = arith.constant 0 : index
    %c0_48 = arith.constant 0 : index
    %58 = vector.load %arg3[%c5_46, %c0_47, %c0_48] : memref<25x128x128xbf16, #tpu.memory_space<vmem>>, vector<1x128x128xbf16>
    %59 = vector.shape_cast %58 : vector<1x128x128xbf16> to vector<128x128xbf16>
    %cst_49 = arith.constant dense<0.000000e+00> : vector<8x128xf32>
    %60 = tpu.matmul %57, %59, %cst_49 {dimension_numbers = #tpu.dot_dimension_numbers<[1], [0], [0], [1], [0, 0, 1, 1], [], []>} : vector<8x128xbf16>, vector<128x128xbf16>, vector<8x128xf32> -> vector<8x128xf32>
    %61 = arith.addf %51, %60 : vector<8x128xf32>
    %c6 = arith.constant 6 : index
    %c0_50 = arith.constant 0 : index
    %c0_51 = arith.constant 0 : index
    %62 = vector.load %arg1[%c6, %c0_50, %c0_51] : memref<25x8x32xbf16, #tpu.memory_space<vmem>>, vector<1x8x32xbf16>
    %63 = vector.shape_cast %62 : vector<1x8x32xbf16> to vector<8x32xbf16>
    %cst_52 = arith.constant dense<0.000000e+00> : vector<8x128xf32>
    %64 = tpu.matmul %63, %0, %cst_52 {dimension_numbers = #tpu.dot_dimension_numbers<[1], [0], [0], [1], [0, 0, 1, 1], [], []>} : vector<8x32xbf16>, vector<32x128xbf16>, vector<8x128xf32> -> vector<8x128xf32>
    %cst_53 = arith.constant 0.000000e+00 : f32
    %65 = vector.broadcast %cst_53 : f32 to vector<8x128xf32>
    %66 = arith.maximumf %64, %65 : vector<8x128xf32>
    %67 = arith.truncf %66 : vector<8x128xf32> to vector<8x128xbf16>
    %c6_54 = arith.constant 6 : index
    %c0_55 = arith.constant 0 : index
    %c0_56 = arith.constant 0 : index
    %68 = vector.load %arg3[%c6_54, %c0_55, %c0_56] : memref<25x128x128xbf16, #tpu.memory_space<vmem>>, vector<1x128x128xbf16>
    %69 = vector.shape_cast %68 : vector<1x128x128xbf16> to vector<128x128xbf16>
    %cst_57 = arith.constant dense<0.000000e+00> : vector<8x128xf32>
    %70 = tpu.matmul %67, %69, %cst_57 {dimension_numbers = #tpu.dot_dimension_numbers<[1], [0], [0], [1], [0, 0, 1, 1], [], []>} : vector<8x128xbf16>, vector<128x128xbf16>, vector<8x128xf32> -> vector<8x128xf32>
    %71 = arith.addf %61, %70 : vector<8x128xf32>
    %c7 = arith.constant 7 : index
    %c0_58 = arith.constant 0 : index
    %c0_59 = arith.constant 0 : index
    %72 = vector.load %arg1[%c7, %c0_58, %c0_59] : memref<25x8x32xbf16, #tpu.memory_space<vmem>>, vector<1x8x32xbf16>
    %73 = vector.shape_cast %72 : vector<1x8x32xbf16> to vector<8x32xbf16>
    %cst_60 = arith.constant dense<0.000000e+00> : vector<8x128xf32>
    %74 = tpu.matmul %73, %0, %cst_60 {dimension_numbers = #tpu.dot_dimension_numbers<[1], [0], [0], [1], [0, 0, 1, 1], [], []>} : vector<8x32xbf16>, vector<32x128xbf16>, vector<8x128xf32> -> vector<8x128xf32>
    %cst_61 = arith.constant 0.000000e+00 : f32
    %75 = vector.broadcast %cst_61 : f32 to vector<8x128xf32>
    %76 = arith.maximumf %74, %75 : vector<8x128xf32>
    %77 = arith.truncf %76 : vector<8x128xf32> to vector<8x128xbf16>
    %c7_62 = arith.constant 7 : index
    %c0_63 = arith.constant 0 : index
    %c0_64 = arith.constant 0 : index
    %78 = vector.load %arg3[%c7_62, %c0_63, %c0_64] : memref<25x128x128xbf16, #tpu.memory_space<vmem>>, vector<1x128x128xbf16>
    %79 = vector.shape_cast %78 : vector<1x128x128xbf16> to vector<128x128xbf16>
    %cst_65 = arith.constant dense<0.000000e+00> : vector<8x128xf32>
    %80 = tpu.matmul %77, %79, %cst_65 {dimension_numbers = #tpu.dot_dimension_numbers<[1], [0], [0], [1], [0, 0, 1, 1], [], []>} : vector<8x128xbf16>, vector<128x128xbf16>, vector<8x128xf32> -> vector<8x128xf32>
    %81 = arith.addf %71, %80 : vector<8x128xf32>
    %c8 = arith.constant 8 : index
    %c0_66 = arith.constant 0 : index
    %c0_67 = arith.constant 0 : index
    %82 = vector.load %arg1[%c8, %c0_66, %c0_67] : memref<25x8x32xbf16, #tpu.memory_space<vmem>>, vector<1x8x32xbf16>
    %83 = vector.shape_cast %82 : vector<1x8x32xbf16> to vector<8x32xbf16>
    %cst_68 = arith.constant dense<0.000000e+00> : vector<8x128xf32>
    %84 = tpu.matmul %83, %0, %cst_68 {dimension_numbers = #tpu.dot_dimension_numbers<[1], [0], [0], [1], [0, 0, 1, 1], [], []>} : vector<8x32xbf16>, vector<32x128xbf16>, vector<8x128xf32> -> vector<8x128xf32>
    %cst_69 = arith.constant 0.000000e+00 : f32
    %85 = vector.broadcast %cst_69 : f32 to vector<8x128xf32>
    %86 = arith.maximumf %84, %85 : vector<8x128xf32>
    %87 = arith.truncf %86 : vector<8x128xf32> to vector<8x128xbf16>
    %c8_70 = arith.constant 8 : index
    %c0_71 = arith.constant 0 : index
    %c0_72 = arith.constant 0 : index
    %88 = vector.load %arg3[%c8_70, %c0_71, %c0_72] : memref<25x128x128xbf16, #tpu.memory_space<vmem>>, vector<1x128x128xbf16>
    %89 = vector.shape_cast %88 : vector<1x128x128xbf16> to vector<128x128xbf16>
    %cst_73 = arith.constant dense<0.000000e+00> : vector<8x128xf32>
    %90 = tpu.matmul %87, %89, %cst_73 {dimension_numbers = #tpu.dot_dimension_numbers<[1], [0], [0], [1], [0, 0, 1, 1], [], []>} : vector<8x128xbf16>, vector<128x128xbf16>, vector<8x128xf32> -> vector<8x128xf32>
    %91 = arith.addf %81, %90 : vector<8x128xf32>
    %c9 = arith.constant 9 : index
    %c0_74 = arith.constant 0 : index
    %c0_75 = arith.constant 0 : index
    %92 = vector.load %arg1[%c9, %c0_74, %c0_75] : memref<25x8x32xbf16, #tpu.memory_space<vmem>>, vector<1x8x32xbf16>
    %93 = vector.shape_cast %92 : vector<1x8x32xbf16> to vector<8x32xbf16>
    %cst_76 = arith.constant dense<0.000000e+00> : vector<8x128xf32>
    %94 = tpu.matmul %93, %0, %cst_76 {dimension_numbers = #tpu.dot_dimension_numbers<[1], [0], [0], [1], [0, 0, 1, 1], [], []>} : vector<8x32xbf16>, vector<32x128xbf16>, vector<8x128xf32> -> vector<8x128xf32>
    %cst_77 = arith.constant 0.000000e+00 : f32
    %95 = vector.broadcast %cst_77 : f32 to vector<8x128xf32>
    %96 = arith.maximumf %94, %95 : vector<8x128xf32>
    %97 = arith.truncf %96 : vector<8x128xf32> to vector<8x128xbf16>
    %c9_78 = arith.constant 9 : index
    %c0_79 = arith.constant 0 : index
    %c0_80 = arith.constant 0 : index
    %98 = vector.load %arg3[%c9_78, %c0_79, %c0_80] : memref<25x128x128xbf16, #tpu.memory_space<vmem>>, vector<1x128x128xbf16>
    %99 = vector.shape_cast %98 : vector<1x128x128xbf16> to vector<128x128xbf16>
    %cst_81 = arith.constant dense<0.000000e+00> : vector<8x128xf32>
    %100 = tpu.matmul %97, %99, %cst_81 {dimension_numbers = #tpu.dot_dimension_numbers<[1], [0], [0], [1], [0, 0, 1, 1], [], []>} : vector<8x128xbf16>, vector<128x128xbf16>, vector<8x128xf32> -> vector<8x128xf32>
    %101 = arith.addf %91, %100 : vector<8x128xf32>
    %c10 = arith.constant 10 : index
    %c0_82 = arith.constant 0 : index
    %c0_83 = arith.constant 0 : index
    %102 = vector.load %arg1[%c10, %c0_82, %c0_83] : memref<25x8x32xbf16, #tpu.memory_space<vmem>>, vector<1x8x32xbf16>
    %103 = vector.shape_cast %102 : vector<1x8x32xbf16> to vector<8x32xbf16>
    %cst_84 = arith.constant dense<0.000000e+00> : vector<8x128xf32>
    %104 = tpu.matmul %103, %0, %cst_84 {dimension_numbers = #tpu.dot_dimension_numbers<[1], [0], [0], [1], [0, 0, 1, 1], [], []>} : vector<8x32xbf16>, vector<32x128xbf16>, vector<8x128xf32> -> vector<8x128xf32>
    %cst_85 = arith.constant 0.000000e+00 : f32
    %105 = vector.broadcast %cst_85 : f32 to vector<8x128xf32>
    %106 = arith.maximumf %104, %105 : vector<8x128xf32>
    %107 = arith.truncf %106 : vector<8x128xf32> to vector<8x128xbf16>
    %c10_86 = arith.constant 10 : index
    %c0_87 = arith.constant 0 : index
    %c0_88 = arith.constant 0 : index
    %108 = vector.load %arg3[%c10_86, %c0_87, %c0_88] : memref<25x128x128xbf16, #tpu.memory_space<vmem>>, vector<1x128x128xbf16>
    %109 = vector.shape_cast %108 : vector<1x128x128xbf16> to vector<128x128xbf16>
    %cst_89 = arith.constant dense<0.000000e+00> : vector<8x128xf32>
    %110 = tpu.matmul %107, %109, %cst_89 {dimension_numbers = #tpu.dot_dimension_numbers<[1], [0], [0], [1], [0, 0, 1, 1], [], []>} : vector<8x128xbf16>, vector<128x128xbf16>, vector<8x128xf32> -> vector<8x128xf32>
    %111 = arith.addf %101, %110 : vector<8x128xf32>
    %c11 = arith.constant 11 : index
    %c0_90 = arith.constant 0 : index
    %c0_91 = arith.constant 0 : index
    %112 = vector.load %arg1[%c11, %c0_90, %c0_91] : memref<25x8x32xbf16, #tpu.memory_space<vmem>>, vector<1x8x32xbf16>
    %113 = vector.shape_cast %112 : vector<1x8x32xbf16> to vector<8x32xbf16>
    %cst_92 = arith.constant dense<0.000000e+00> : vector<8x128xf32>
    %114 = tpu.matmul %113, %0, %cst_92 {dimension_numbers = #tpu.dot_dimension_numbers<[1], [0], [0], [1], [0, 0, 1, 1], [], []>} : vector<8x32xbf16>, vector<32x128xbf16>, vector<8x128xf32> -> vector<8x128xf32>
    %cst_93 = arith.constant 0.000000e+00 : f32
    %115 = vector.broadcast %cst_93 : f32 to vector<8x128xf32>
    %116 = arith.maximumf %114, %115 : vector<8x128xf32>
    %117 = arith.truncf %116 : vector<8x128xf32> to vector<8x128xbf16>
    %c11_94 = arith.constant 11 : index
    %c0_95 = arith.constant 0 : index
    %c0_96 = arith.constant 0 : index
    %118 = vector.load %arg3[%c11_94, %c0_95, %c0_96] : memref<25x128x128xbf16, #tpu.memory_space<vmem>>, vector<1x128x128xbf16>
    %119 = vector.shape_cast %118 : vector<1x128x128xbf16> to vector<128x128xbf16>
    %cst_97 = arith.constant dense<0.000000e+00> : vector<8x128xf32>
    %120 = tpu.matmul %117, %119, %cst_97 {dimension_numbers = #tpu.dot_dimension_numbers<[1], [0], [0], [1], [0, 0, 1, 1], [], []>} : vector<8x128xbf16>, vector<128x128xbf16>, vector<8x128xf32> -> vector<8x128xf32>
    %121 = arith.addf %111, %120 : vector<8x128xf32>
    %c12 = arith.constant 12 : index
    %c0_98 = arith.constant 0 : index
    %c0_99 = arith.constant 0 : index
    %122 = vector.load %arg1[%c12, %c0_98, %c0_99] : memref<25x8x32xbf16, #tpu.memory_space<vmem>>, vector<1x8x32xbf16>
    %123 = vector.shape_cast %122 : vector<1x8x32xbf16> to vector<8x32xbf16>
    %cst_100 = arith.constant dense<0.000000e+00> : vector<8x128xf32>
    %124 = tpu.matmul %123, %0, %cst_100 {dimension_numbers = #tpu.dot_dimension_numbers<[1], [0], [0], [1], [0, 0, 1, 1], [], []>} : vector<8x32xbf16>, vector<32x128xbf16>, vector<8x128xf32> -> vector<8x128xf32>
    %cst_101 = arith.constant 0.000000e+00 : f32
    %125 = vector.broadcast %cst_101 : f32 to vector<8x128xf32>
    %126 = arith.maximumf %124, %125 : vector<8x128xf32>
    %127 = arith.truncf %126 : vector<8x128xf32> to vector<8x128xbf16>
    %c12_102 = arith.constant 12 : index
    %c0_103 = arith.constant 0 : index
    %c0_104 = arith.constant 0 : index
    %128 = vector.load %arg3[%c12_102, %c0_103, %c0_104] : memref<25x128x128xbf16, #tpu.memory_space<vmem>>, vector<1x128x128xbf16>
    %129 = vector.shape_cast %128 : vector<1x128x128xbf16> to vector<128x128xbf16>
    %cst_105 = arith.constant dense<0.000000e+00> : vector<8x128xf32>
    %130 = tpu.matmul %127, %129, %cst_105 {dimension_numbers = #tpu.dot_dimension_numbers<[1], [0], [0], [1], [0, 0, 1, 1], [], []>} : vector<8x128xbf16>, vector<128x128xbf16>, vector<8x128xf32> -> vector<8x128xf32>
    %131 = arith.addf %121, %130 : vector<8x128xf32>
    %c13 = arith.constant 13 : index
    %c0_106 = arith.constant 0 : index
    %c0_107 = arith.constant 0 : index
    %132 = vector.load %arg1[%c13, %c0_106, %c0_107] : memref<25x8x32xbf16, #tpu.memory_space<vmem>>, vector<1x8x32xbf16>
    %133 = vector.shape_cast %132 : vector<1x8x32xbf16> to vector<8x32xbf16>
    %cst_108 = arith.constant dense<0.000000e+00> : vector<8x128xf32>
    %134 = tpu.matmul %133, %0, %cst_108 {dimension_numbers = #tpu.dot_dimension_numbers<[1], [0], [0], [1], [0, 0, 1, 1], [], []>} : vector<8x32xbf16>, vector<32x128xbf16>, vector<8x128xf32> -> vector<8x128xf32>
    %cst_109 = arith.constant 0.000000e+00 : f32
    %135 = vector.broadcast %cst_109 : f32 to vector<8x128xf32>
    %136 = arith.maximumf %134, %135 : vector<8x128xf32>
    %137 = arith.truncf %136 : vector<8x128xf32> to vector<8x128xbf16>
    %c13_110 = arith.constant 13 : index
    %c0_111 = arith.constant 0 : index
    %c0_112 = arith.constant 0 : index
    %138 = vector.load %arg3[%c13_110, %c0_111, %c0_112] : memref<25x128x128xbf16, #tpu.memory_space<vmem>>, vector<1x128x128xbf16>
    %139 = vector.shape_cast %138 : vector<1x128x128xbf16> to vector<128x128xbf16>
    %cst_113 = arith.constant dense<0.000000e+00> : vector<8x128xf32>
    %140 = tpu.matmul %137, %139, %cst_113 {dimension_numbers = #tpu.dot_dimension_numbers<[1], [0], [0], [1], [0, 0, 1, 1], [], []>} : vector<8x128xbf16>, vector<128x128xbf16>, vector<8x128xf32> -> vector<8x128xf32>
    %141 = arith.addf %131, %140 : vector<8x128xf32>
    %c14 = arith.constant 14 : index
    %c0_114 = arith.constant 0 : index
    %c0_115 = arith.constant 0 : index
    %142 = vector.load %arg1[%c14, %c0_114, %c0_115] : memref<25x8x32xbf16, #tpu.memory_space<vmem>>, vector<1x8x32xbf16>
    %143 = vector.shape_cast %142 : vector<1x8x32xbf16> to vector<8x32xbf16>
    %cst_116 = arith.constant dense<0.000000e+00> : vector<8x128xf32>
    %144 = tpu.matmul %143, %0, %cst_116 {dimension_numbers = #tpu.dot_dimension_numbers<[1], [0], [0], [1], [0, 0, 1, 1], [], []>} : vector<8x32xbf16>, vector<32x128xbf16>, vector<8x128xf32> -> vector<8x128xf32>
    %cst_117 = arith.constant 0.000000e+00 : f32
    %145 = vector.broadcast %cst_117 : f32 to vector<8x128xf32>
    %146 = arith.maximumf %144, %145 : vector<8x128xf32>
    %147 = arith.truncf %146 : vector<8x128xf32> to vector<8x128xbf16>
    %c14_118 = arith.constant 14 : index
    %c0_119 = arith.constant 0 : index
    %c0_120 = arith.constant 0 : index
    %148 = vector.load %arg3[%c14_118, %c0_119, %c0_120] : memref<25x128x128xbf16, #tpu.memory_space<vmem>>, vector<1x128x128xbf16>
    %149 = vector.shape_cast %148 : vector<1x128x128xbf16> to vector<128x128xbf16>
    %cst_121 = arith.constant dense<0.000000e+00> : vector<8x128xf32>
    %150 = tpu.matmul %147, %149, %cst_121 {dimension_numbers = #tpu.dot_dimension_numbers<[1], [0], [0], [1], [0, 0, 1, 1], [], []>} : vector<8x128xbf16>, vector<128x128xbf16>, vector<8x128xf32> -> vector<8x128xf32>
    %151 = arith.addf %141, %150 : vector<8x128xf32>
    %c15 = arith.constant 15 : index
    %c0_122 = arith.constant 0 : index
    %c0_123 = arith.constant 0 : index
    %152 = vector.load %arg1[%c15, %c0_122, %c0_123] : memref<25x8x32xbf16, #tpu.memory_space<vmem>>, vector<1x8x32xbf16>
    %153 = vector.shape_cast %152 : vector<1x8x32xbf16> to vector<8x32xbf16>
    %cst_124 = arith.constant dense<0.000000e+00> : vector<8x128xf32>
    %154 = tpu.matmul %153, %0, %cst_124 {dimension_numbers = #tpu.dot_dimension_numbers<[1], [0], [0], [1], [0, 0, 1, 1], [], []>} : vector<8x32xbf16>, vector<32x128xbf16>, vector<8x128xf32> -> vector<8x128xf32>
    %cst_125 = arith.constant 0.000000e+00 : f32
    %155 = vector.broadcast %cst_125 : f32 to vector<8x128xf32>
    %156 = arith.maximumf %154, %155 : vector<8x128xf32>
    %157 = arith.truncf %156 : vector<8x128xf32> to vector<8x128xbf16>
    %c15_126 = arith.constant 15 : index
    %c0_127 = arith.constant 0 : index
    %c0_128 = arith.constant 0 : index
    %158 = vector.load %arg3[%c15_126, %c0_127, %c0_128] : memref<25x128x128xbf16, #tpu.memory_space<vmem>>, vector<1x128x128xbf16>
    %159 = vector.shape_cast %158 : vector<1x128x128xbf16> to vector<128x128xbf16>
    %cst_129 = arith.constant dense<0.000000e+00> : vector<8x128xf32>
    %160 = tpu.matmul %157, %159, %cst_129 {dimension_numbers = #tpu.dot_dimension_numbers<[1], [0], [0], [1], [0, 0, 1, 1], [], []>} : vector<8x128xbf16>, vector<128x128xbf16>, vector<8x128xf32> -> vector<8x128xf32>
    %161 = arith.addf %151, %160 : vector<8x128xf32>
    %c16 = arith.constant 16 : index
    %c0_130 = arith.constant 0 : index
    %c0_131 = arith.constant 0 : index
    %162 = vector.load %arg1[%c16, %c0_130, %c0_131] : memref<25x8x32xbf16, #tpu.memory_space<vmem>>, vector<1x8x32xbf16>
    %163 = vector.shape_cast %162 : vector<1x8x32xbf16> to vector<8x32xbf16>
    %cst_132 = arith.constant dense<0.000000e+00> : vector<8x128xf32>
    %164 = tpu.matmul %163, %0, %cst_132 {dimension_numbers = #tpu.dot_dimension_numbers<[1], [0], [0], [1], [0, 0, 1, 1], [], []>} : vector<8x32xbf16>, vector<32x128xbf16>, vector<8x128xf32> -> vector<8x128xf32>
    %cst_133 = arith.constant 0.000000e+00 : f32
    %165 = vector.broadcast %cst_133 : f32 to vector<8x128xf32>
    %166 = arith.maximumf %164, %165 : vector<8x128xf32>
    %167 = arith.truncf %166 : vector<8x128xf32> to vector<8x128xbf16>
    %c16_134 = arith.constant 16 : index
    %c0_135 = arith.constant 0 : index
    %c0_136 = arith.constant 0 : index
    %168 = vector.load %arg3[%c16_134, %c0_135, %c0_136] : memref<25x128x128xbf16, #tpu.memory_space<vmem>>, vector<1x128x128xbf16>
    %169 = vector.shape_cast %168 : vector<1x128x128xbf16> to vector<128x128xbf16>
    %cst_137 = arith.constant dense<0.000000e+00> : vector<8x128xf32>
    %170 = tpu.matmul %167, %169, %cst_137 {dimension_numbers = #tpu.dot_dimension_numbers<[1], [0], [0], [1], [0, 0, 1, 1], [], []>} : vector<8x128xbf16>, vector<128x128xbf16>, vector<8x128xf32> -> vector<8x128xf32>
    %171 = arith.addf %161, %170 : vector<8x128xf32>
    %c17 = arith.constant 17 : index
    %c0_138 = arith.constant 0 : index
    %c0_139 = arith.constant 0 : index
    %172 = vector.load %arg1[%c17, %c0_138, %c0_139] : memref<25x8x32xbf16, #tpu.memory_space<vmem>>, vector<1x8x32xbf16>
    %173 = vector.shape_cast %172 : vector<1x8x32xbf16> to vector<8x32xbf16>
    %cst_140 = arith.constant dense<0.000000e+00> : vector<8x128xf32>
    %174 = tpu.matmul %173, %0, %cst_140 {dimension_numbers = #tpu.dot_dimension_numbers<[1], [0], [0], [1], [0, 0, 1, 1], [], []>} : vector<8x32xbf16>, vector<32x128xbf16>, vector<8x128xf32> -> vector<8x128xf32>
    %cst_141 = arith.constant 0.000000e+00 : f32
    %175 = vector.broadcast %cst_141 : f32 to vector<8x128xf32>
    %176 = arith.maximumf %174, %175 : vector<8x128xf32>
    %177 = arith.truncf %176 : vector<8x128xf32> to vector<8x128xbf16>
    %c17_142 = arith.constant 17 : index
    %c0_143 = arith.constant 0 : index
    %c0_144 = arith.constant 0 : index
    %178 = vector.load %arg3[%c17_142, %c0_143, %c0_144] : memref<25x128x128xbf16, #tpu.memory_space<vmem>>, vector<1x128x128xbf16>
    %179 = vector.shape_cast %178 : vector<1x128x128xbf16> to vector<128x128xbf16>
    %cst_145 = arith.constant dense<0.000000e+00> : vector<8x128xf32>
    %180 = tpu.matmul %177, %179, %cst_145 {dimension_numbers = #tpu.dot_dimension_numbers<[1], [0], [0], [1], [0, 0, 1, 1], [], []>} : vector<8x128xbf16>, vector<128x128xbf16>, vector<8x128xf32> -> vector<8x128xf32>
    %181 = arith.addf %171, %180 : vector<8x128xf32>
    %c18 = arith.constant 18 : index
    %c0_146 = arith.constant 0 : index
    %c0_147 = arith.constant 0 : index
    %182 = vector.load %arg1[%c18, %c0_146, %c0_147] : memref<25x8x32xbf16, #tpu.memory_space<vmem>>, vector<1x8x32xbf16>
    %183 = vector.shape_cast %182 : vector<1x8x32xbf16> to vector<8x32xbf16>
    %cst_148 = arith.constant dense<0.000000e+00> : vector<8x128xf32>
    %184 = tpu.matmul %183, %0, %cst_148 {dimension_numbers = #tpu.dot_dimension_numbers<[1], [0], [0], [1], [0, 0, 1, 1], [], []>} : vector<8x32xbf16>, vector<32x128xbf16>, vector<8x128xf32> -> vector<8x128xf32>
    %cst_149 = arith.constant 0.000000e+00 : f32
    %185 = vector.broadcast %cst_149 : f32 to vector<8x128xf32>
    %186 = arith.maximumf %184, %185 : vector<8x128xf32>
    %187 = arith.truncf %186 : vector<8x128xf32> to vector<8x128xbf16>
    %c18_150 = arith.constant 18 : index
    %c0_151 = arith.constant 0 : index
    %c0_152 = arith.constant 0 : index
    %188 = vector.load %arg3[%c18_150, %c0_151, %c0_152] : memref<25x128x128xbf16, #tpu.memory_space<vmem>>, vector<1x128x128xbf16>
    %189 = vector.shape_cast %188 : vector<1x128x128xbf16> to vector<128x128xbf16>
    %cst_153 = arith.constant dense<0.000000e+00> : vector<8x128xf32>
    %190 = tpu.matmul %187, %189, %cst_153 {dimension_numbers = #tpu.dot_dimension_numbers<[1], [0], [0], [1], [0, 0, 1, 1], [], []>} : vector<8x128xbf16>, vector<128x128xbf16>, vector<8x128xf32> -> vector<8x128xf32>
    %191 = arith.addf %181, %190 : vector<8x128xf32>
    %c19 = arith.constant 19 : index
    %c0_154 = arith.constant 0 : index
    %c0_155 = arith.constant 0 : index
    %192 = vector.load %arg1[%c19, %c0_154, %c0_155] : memref<25x8x32xbf16, #tpu.memory_space<vmem>>, vector<1x8x32xbf16>
    %193 = vector.shape_cast %192 : vector<1x8x32xbf16> to vector<8x32xbf16>
    %cst_156 = arith.constant dense<0.000000e+00> : vector<8x128xf32>
    %194 = tpu.matmul %193, %0, %cst_156 {dimension_numbers = #tpu.dot_dimension_numbers<[1], [0], [0], [1], [0, 0, 1, 1], [], []>} : vector<8x32xbf16>, vector<32x128xbf16>, vector<8x128xf32> -> vector<8x128xf32>
    %cst_157 = arith.constant 0.000000e+00 : f32
    %195 = vector.broadcast %cst_157 : f32 to vector<8x128xf32>
    %196 = arith.maximumf %194, %195 : vector<8x128xf32>
    %197 = arith.truncf %196 : vector<8x128xf32> to vector<8x128xbf16>
    %c19_158 = arith.constant 19 : index
    %c0_159 = arith.constant 0 : index
    %c0_160 = arith.constant 0 : index
    %198 = vector.load %arg3[%c19_158, %c0_159, %c0_160] : memref<25x128x128xbf16, #tpu.memory_space<vmem>>, vector<1x128x128xbf16>
    %199 = vector.shape_cast %198 : vector<1x128x128xbf16> to vector<128x128xbf16>
    %cst_161 = arith.constant dense<0.000000e+00> : vector<8x128xf32>
    %200 = tpu.matmul %197, %199, %cst_161 {dimension_numbers = #tpu.dot_dimension_numbers<[1], [0], [0], [1], [0, 0, 1, 1], [], []>} : vector<8x128xbf16>, vector<128x128xbf16>, vector<8x128xf32> -> vector<8x128xf32>
    %201 = arith.addf %191, %200 : vector<8x128xf32>
    %c20 = arith.constant 20 : index
    %c0_162 = arith.constant 0 : index
    %c0_163 = arith.constant 0 : index
    %202 = vector.load %arg1[%c20, %c0_162, %c0_163] : memref<25x8x32xbf16, #tpu.memory_space<vmem>>, vector<1x8x32xbf16>
    %203 = vector.shape_cast %202 : vector<1x8x32xbf16> to vector<8x32xbf16>
    %cst_164 = arith.constant dense<0.000000e+00> : vector<8x128xf32>
    %204 = tpu.matmul %203, %0, %cst_164 {dimension_numbers = #tpu.dot_dimension_numbers<[1], [0], [0], [1], [0, 0, 1, 1], [], []>} : vector<8x32xbf16>, vector<32x128xbf16>, vector<8x128xf32> -> vector<8x128xf32>
    %cst_165 = arith.constant 0.000000e+00 : f32
    %205 = vector.broadcast %cst_165 : f32 to vector<8x128xf32>
    %206 = arith.maximumf %204, %205 : vector<8x128xf32>
    %207 = arith.truncf %206 : vector<8x128xf32> to vector<8x128xbf16>
    %c20_166 = arith.constant 20 : index
    %c0_167 = arith.constant 0 : index
    %c0_168 = arith.constant 0 : index
    %208 = vector.load %arg3[%c20_166, %c0_167, %c0_168] : memref<25x128x128xbf16, #tpu.memory_space<vmem>>, vector<1x128x128xbf16>
    %209 = vector.shape_cast %208 : vector<1x128x128xbf16> to vector<128x128xbf16>
    %cst_169 = arith.constant dense<0.000000e+00> : vector<8x128xf32>
    %210 = tpu.matmul %207, %209, %cst_169 {dimension_numbers = #tpu.dot_dimension_numbers<[1], [0], [0], [1], [0, 0, 1, 1], [], []>} : vector<8x128xbf16>, vector<128x128xbf16>, vector<8x128xf32> -> vector<8x128xf32>
    %211 = arith.addf %201, %210 : vector<8x128xf32>
    %c21 = arith.constant 21 : index
    %c0_170 = arith.constant 0 : index
    %c0_171 = arith.constant 0 : index
    %212 = vector.load %arg1[%c21, %c0_170, %c0_171] : memref<25x8x32xbf16, #tpu.memory_space<vmem>>, vector<1x8x32xbf16>
    %213 = vector.shape_cast %212 : vector<1x8x32xbf16> to vector<8x32xbf16>
    %cst_172 = arith.constant dense<0.000000e+00> : vector<8x128xf32>
    %214 = tpu.matmul %213, %0, %cst_172 {dimension_numbers = #tpu.dot_dimension_numbers<[1], [0], [0], [1], [0, 0, 1, 1], [], []>} : vector<8x32xbf16>, vector<32x128xbf16>, vector<8x128xf32> -> vector<8x128xf32>
    %cst_173 = arith.constant 0.000000e+00 : f32
    %215 = vector.broadcast %cst_173 : f32 to vector<8x128xf32>
    %216 = arith.maximumf %214, %215 : vector<8x128xf32>
    %217 = arith.truncf %216 : vector<8x128xf32> to vector<8x128xbf16>
    %c21_174 = arith.constant 21 : index
    %c0_175 = arith.constant 0 : index
    %c0_176 = arith.constant 0 : index
    %218 = vector.load %arg3[%c21_174, %c0_175, %c0_176] : memref<25x128x128xbf16, #tpu.memory_space<vmem>>, vector<1x128x128xbf16>
    %219 = vector.shape_cast %218 : vector<1x128x128xbf16> to vector<128x128xbf16>
    %cst_177 = arith.constant dense<0.000000e+00> : vector<8x128xf32>
    %220 = tpu.matmul %217, %219, %cst_177 {dimension_numbers = #tpu.dot_dimension_numbers<[1], [0], [0], [1], [0, 0, 1, 1], [], []>} : vector<8x128xbf16>, vector<128x128xbf16>, vector<8x128xf32> -> vector<8x128xf32>
    %221 = arith.addf %211, %220 : vector<8x128xf32>
    %c22 = arith.constant 22 : index
    %c0_178 = arith.constant 0 : index
    %c0_179 = arith.constant 0 : index
    %222 = vector.load %arg1[%c22, %c0_178, %c0_179] : memref<25x8x32xbf16, #tpu.memory_space<vmem>>, vector<1x8x32xbf16>
    %223 = vector.shape_cast %222 : vector<1x8x32xbf16> to vector<8x32xbf16>
    %cst_180 = arith.constant dense<0.000000e+00> : vector<8x128xf32>
    %224 = tpu.matmul %223, %0, %cst_180 {dimension_numbers = #tpu.dot_dimension_numbers<[1], [0], [0], [1], [0, 0, 1, 1], [], []>} : vector<8x32xbf16>, vector<32x128xbf16>, vector<8x128xf32> -> vector<8x128xf32>
    %cst_181 = arith.constant 0.000000e+00 : f32
    %225 = vector.broadcast %cst_181 : f32 to vector<8x128xf32>
    %226 = arith.maximumf %224, %225 : vector<8x128xf32>
    %227 = arith.truncf %226 : vector<8x128xf32> to vector<8x128xbf16>
    %c22_182 = arith.constant 22 : index
    %c0_183 = arith.constant 0 : index
    %c0_184 = arith.constant 0 : index
    %228 = vector.load %arg3[%c22_182, %c0_183, %c0_184] : memref<25x128x128xbf16, #tpu.memory_space<vmem>>, vector<1x128x128xbf16>
    %229 = vector.shape_cast %228 : vector<1x128x128xbf16> to vector<128x128xbf16>
    %cst_185 = arith.constant dense<0.000000e+00> : vector<8x128xf32>
    %230 = tpu.matmul %227, %229, %cst_185 {dimension_numbers = #tpu.dot_dimension_numbers<[1], [0], [0], [1], [0, 0, 1, 1], [], []>} : vector<8x128xbf16>, vector<128x128xbf16>, vector<8x128xf32> -> vector<8x128xf32>
    %231 = arith.addf %221, %230 : vector<8x128xf32>
    %c23 = arith.constant 23 : index
    %c0_186 = arith.constant 0 : index
    %c0_187 = arith.constant 0 : index
    %232 = vector.load %arg1[%c23, %c0_186, %c0_187] : memref<25x8x32xbf16, #tpu.memory_space<vmem>>, vector<1x8x32xbf16>
    %233 = vector.shape_cast %232 : vector<1x8x32xbf16> to vector<8x32xbf16>
    %cst_188 = arith.constant dense<0.000000e+00> : vector<8x128xf32>
    %234 = tpu.matmul %233, %0, %cst_188 {dimension_numbers = #tpu.dot_dimension_numbers<[1], [0], [0], [1], [0, 0, 1, 1], [], []>} : vector<8x32xbf16>, vector<32x128xbf16>, vector<8x128xf32> -> vector<8x128xf32>
    %cst_189 = arith.constant 0.000000e+00 : f32
    %235 = vector.broadcast %cst_189 : f32 to vector<8x128xf32>
    %236 = arith.maximumf %234, %235 : vector<8x128xf32>
    %237 = arith.truncf %236 : vector<8x128xf32> to vector<8x128xbf16>
    %c23_190 = arith.constant 23 : index
    %c0_191 = arith.constant 0 : index
    %c0_192 = arith.constant 0 : index
    %238 = vector.load %arg3[%c23_190, %c0_191, %c0_192] : memref<25x128x128xbf16, #tpu.memory_space<vmem>>, vector<1x128x128xbf16>
    %239 = vector.shape_cast %238 : vector<1x128x128xbf16> to vector<128x128xbf16>
    %cst_193 = arith.constant dense<0.000000e+00> : vector<8x128xf32>
    %240 = tpu.matmul %237, %239, %cst_193 {dimension_numbers = #tpu.dot_dimension_numbers<[1], [0], [0], [1], [0, 0, 1, 1], [], []>} : vector<8x128xbf16>, vector<128x128xbf16>, vector<8x128xf32> -> vector<8x128xf32>
    %241 = arith.addf %231, %240 : vector<8x128xf32>
    %c24 = arith.constant 24 : index
    %c0_194 = arith.constant 0 : index
    %c0_195 = arith.constant 0 : index
    %242 = vector.load %arg1[%c24, %c0_194, %c0_195] : memref<25x8x32xbf16, #tpu.memory_space<vmem>>, vector<1x8x32xbf16>
    %243 = vector.shape_cast %242 : vector<1x8x32xbf16> to vector<8x32xbf16>
    %cst_196 = arith.constant dense<0.000000e+00> : vector<8x128xf32>
    %244 = tpu.matmul %243, %0, %cst_196 {dimension_numbers = #tpu.dot_dimension_numbers<[1], [0], [0], [1], [0, 0, 1, 1], [], []>} : vector<8x32xbf16>, vector<32x128xbf16>, vector<8x128xf32> -> vector<8x128xf32>
    %cst_197 = arith.constant 0.000000e+00 : f32
    %245 = vector.broadcast %cst_197 : f32 to vector<8x128xf32>
    %246 = arith.maximumf %244, %245 : vector<8x128xf32>
    %247 = arith.truncf %246 : vector<8x128xf32> to vector<8x128xbf16>
    %c24_198 = arith.constant 24 : index
    %c0_199 = arith.constant 0 : index
    %c0_200 = arith.constant 0 : index
    %248 = vector.load %arg3[%c24_198, %c0_199, %c0_200] : memref<25x128x128xbf16, #tpu.memory_space<vmem>>, vector<1x128x128xbf16>
    %249 = vector.shape_cast %248 : vector<1x128x128xbf16> to vector<128x128xbf16>
    %cst_201 = arith.constant dense<0.000000e+00> : vector<8x128xf32>
    %250 = tpu.matmul %247, %249, %cst_201 {dimension_numbers = #tpu.dot_dimension_numbers<[1], [0], [0], [1], [0, 0, 1, 1], [], []>} : vector<8x128xbf16>, vector<128x128xbf16>, vector<8x128xf32> -> vector<8x128xf32>
    %251 = arith.addf %241, %250 : vector<8x128xf32>
    %c0_202 = arith.constant 0 : index
    %c0_203 = arith.constant 0 : index
    %252 = vector.load %arg4[%c0_202, %c0_203] : memref<1x128xf32, #tpu.memory_space<vmem>>, vector<1x128xf32>
    %253 = vector.broadcast %252 : vector<1x128xf32> to vector<8x128xf32>
    %254 = arith.addf %251, %253 : vector<8x128xf32>
    %cst_204 = arith.constant 0.000000e+00 : f32
    %255 = vector.broadcast %cst_204 : f32 to vector<8x128xf32>
    %256 = arith.maximumf %254, %255 : vector<8x128xf32>
    %257 = arith.truncf %256 : vector<8x128xf32> to vector<8x128xbf16>
    %c0_205 = arith.constant 0 : index
    %c0_206 = arith.constant 0 : index
    %258 = vector.load %arg5[%c0_205, %c0_206] : memref<128x128xbf16, #tpu.memory_space<vmem>>, vector<128x128xbf16>
    %cst_207 = arith.constant dense<0.000000e+00> : vector<8x128xf32>
    %259 = tpu.matmul %257, %258, %cst_207 {dimension_numbers = #tpu.dot_dimension_numbers<[1], [0], [0], [1], [0, 0, 1, 1], [], []>} : vector<8x128xbf16>, vector<128x128xbf16>, vector<8x128xf32> -> vector<8x128xf32>
    %c0_208 = arith.constant 0 : index
    %c0_209 = arith.constant 0 : index
    %260 = vector.load %arg6[%c0_208, %c0_209] : memref<1x128xf32, #tpu.memory_space<vmem>>, vector<1x128xf32>
    %261 = vector.broadcast %260 : vector<1x128xf32> to vector<8x128xf32>
    %262 = arith.addf %259, %261 : vector<8x128xf32>
    %263 = arith.truncf %262 : vector<8x128xf32> to vector<8x128xbf16>
    %c0_210 = arith.constant 0 : index
    %c0_211 = arith.constant 0 : index
    %264 = vector.load %arg7[%c0_210, %c0_211] : memref<8x128xbf16, #tpu.memory_space<vmem>>, vector<8x128xbf16>
    tpu.vector_store %arg7[%c0_210, %c0_211], %263 {strides = array<i32>} : memref<8x128xbf16, #tpu.memory_space<vmem>>, vector<8x128xbf16>,
    return
  }
  func.func @transform_0(%arg0: i32) -> (i32, i32, i32) {
    %c0_i32 = arith.constant 0 : i32
    %c0_i32_0 = arith.constant 0 : i32
    %c0_i32_1 = arith.constant 0 : i32
    return %c0_i32, %arg0, %c0_i32_0 : i32, i32, i32
  }
  func.func @transform_1(%arg0: i32) -> (i32, i32) {
    %c0_i32 = arith.constant 0 : i32
    %c0_i32_0 = arith.constant 0 : i32
    %c0_i32_1 = arith.constant 0 : i32
    return %c0_i32, %c0_i32_0 : i32, i32
  }
  func.func @transform_2(%arg0: i32) -> (i32, i32, i32) {
    %c0_i32 = arith.constant 0 : i32
    %c0_i32_0 = arith.constant 0 : i32
    %c0_i32_1 = arith.constant 0 : i32
    %c0_i32_2 = arith.constant 0 : i32
    return %c0_i32, %c0_i32_0, %c0_i32_1 : i32, i32, i32
  }
  func.func @transform_3(%arg0: i32) -> (i32, i32) {
    %c0_i32 = arith.constant 0 : i32
    %c0_i32_0 = arith.constant 0 : i32
    %c0_i32_1 = arith.constant 0 : i32
    return %c0_i32, %c0_i32_0 : i32, i32
  }
  func.func @transform_4(%arg0: i32) -> (i32, i32) {
    %c0_i32 = arith.constant 0 : i32
    %c0_i32_0 = arith.constant 0 : i32
    %c0_i32_1 = arith.constant 0 : i32
    return %c0_i32, %c0_i32_0 : i32, i32
  }
  func.func @transform_5(%arg0: i32) -> (i32, i32) {
    %c0_i32 = arith.constant 0 : i32
    %c0_i32_0 = arith.constant 0 : i32
    %c0_i32_1 = arith.constant 0 : i32
    return %c0_i32, %c0_i32_0 : i32, i32
  }
  func.func @transform_6(%arg0: i32) -> (i32, i32) {
    %c0_i32 = arith.constant 0 : i32
    %c0_i32_0 = arith.constant 0 : i32
    return %arg0, %c0_i32 : i32, i32
  }
}

</mosaic_0001>

<bundles_post_ra>
// kernel: decomposed_conv_net_forward.1
= control target key start
LH: loop header
LB: loop body
LE: loop exit
PB: predicated region body
PF: predicated region fallthrough
CT: control target
= control target key end

     0   :  { %11 = vsyncpa [#allocation3], 0  ;;  %s5535_s21 = smov [#allocation2]   ;;  %s6184_s0 = inlined_call_operand.vmem [shape: bf16[25,8,32], index: 0, kind: input, shape index: {}]   ;;  %s6185_s1 = inlined_call_operand.vmem [shape: bf16[32,128], index: 1, kind: input, shape index: {}]   ;;  %s6186_s2 = inlined_call_operand.hbm [shape: bf16[25,128,128], index: 2, kind: input, shape index: {}]   ;;  %s6187_s3 = inlined_call_operand.vmem [shape: f32[1,128], index: 3, kind: input, shape index: {}]   ;;  %s6188_s4 = inlined_call_operand.vmem [shape: bf16[128,128], index: 4, kind: input, shape index: {}]   ;;  %s6189_s5 = inlined_call_operand.vmem [shape: f32[1,128], index: 5, kind: input, shape index: {}]   ;;  %s6190_s6 = inlined_call_operand.vmem [shape: bf16[8,128], index: 6, kind: output, shape index: {}]  }
   0x1   :  { %s21_s22 = sshll.u32 %s5535_s21, 4  ;;  %s22_s22 = int_to_ptr.vmem [resolvable:$true] %s21_s22 }
   0x2   :  { %s5521_s23 = scalar_lea.vmem %s22_s22, 25600  ;;  %p5526_p1 = scmp.lt.s32.totalorder %s22_s22, %s22_s22 }
   0x3   :  { %p5522_p0 = scmp.ne.s32.totalorder %s22_s22, %s5521_s23  ;;  %p5527_p2 = scmp.lt.s32.totalorder %s5521_s23, %s5521_s23 }
   0x5   :  { %p5528_p3 = por %p5527_p2, %p5526_p1 }
   0x7   :  { %p5529_p4 = pnand %p5528_p3, %p5522_p0 }
   0x9   :  { %5532 = shalt.err (!%p5529_p4)
}
   0xa   :  { %s5536_s24 = smov 64   ;;  %s5537_s25 = smov 4  }
   0xb   :  { %27 = dma.hbm_to_vmem [thread:$0]  %s6186_s2, 25600, %s22_s22, [#allocation3], %s5536_s24, %s5536_s24, %s5537_s25  }
   0xc   :  { %5533 = dma.done.wait [#allocation3], 25600  }
   0xd   :  { %5534 = vsyncadd [#allocation3], 4294941696  ;;  %v5538_v0 = vmov 0.0   ;;  %vm5539_vm0 = vmmov 0   ;;  %v5587_v1 = vld [vmem:[%s6185_s1 + $0x8] sm:$0xff]   ;;  %v5594_v2 = vld [vmem:[%s6185_s1] sm:$0xff]  }
   0xe   :  { %4574 = vmatprep.subr.bf16.mxu0 %v5538_v0  ;;  %4582 = vmatprep.subr.bf16.mxu1 %v5538_v0  ;;  %v42_v3 = vld [vmem:[%s6184_s0] sm:$0xf]  ;;  %v4007_v4 = vld [vmem:[%s6184_s0 + $0x4] sm:$0xf]  ;;  %v5301_v5 = vld [vmem:[#allocation2 + $0x78] sm:$0xff]   ;;  %vm55_vm1 = vcmask 261120  }
   0xf   :  { %4578 = vmatprep.mubr.msk.bf16.mxu0 %vm5539_vm0, %v5538_v0  ;;  %4586 = vmatprep.mubr.msk.bf16.mxu1 %vm5539_vm0, %v5538_v0  ;;  %v5302_v6 = vld [vmem:[#allocation2 + $0x38] sm:$0xff]   ;;  %v5303_v7 = vld [vmem:[#allocation2 + $0x70] sm:$0xff]   ;;  %v5305_v9 = vld [vmem:[#allocation2 + $0x68] sm:$0xff]  }
  0x10   :  { %4575 = vmatpush3.bf16.msra.mxu0 %v5587_v1  ;;  %4583 = vmatpush3.bf16.msra.mxu1 %v5587_v1  ;;  %v5304_v8 = vld [vmem:[#allocation2 + $0x30] sm:$0xff]   ;;  %v5306_v10 = vld [vmem:[#allocation2 + $0x28] sm:$0xff]   ;;  %v5307_v11 = vld [vmem:[#allocation2 + $0x60] sm:$0xff]  }
  0x11   :  { %4576 = vmatprep.subr.bf16.mxu0 %v5538_v0  ;;  %4584 = vmatprep.subr.bf16.mxu1 %v5538_v0  ;;  %v5308_v12 = vld [vmem:[#allocation2 + $0x20] sm:$0xff]   ;;  %v5309_v13 = vld [vmem:[#allocation2 + $0x58] sm:$0xff]   ;;  %v5311_v15 = vld [vmem:[#allocation2 + $0x50] sm:$0xff]  }
  0x12   :  { %v5310_v14 = vld [vmem:[#allocation2 + $0x18] sm:$0xff]   ;;  %v5312_v16 = vld [vmem:[#allocation2 + $0x10] sm:$0xff]   ;;  %v5313_v17 = vld [vmem:[#allocation2 + $0x48] sm:$0xff]  }
  0x13   :  { %v5314_v18 = vld [vmem:[#allocation2 + $0x8] sm:$0xff]   ;;  %v5315_v19 = vld [vmem:[#allocation2 + $0x40] sm:$0xff]   ;;  %v5317_v29 = vld [vmem:[#allocation2 + $0xb8] sm:$0xff]  }
  0x14   :  { %4577 = vmatpush3.bf16.msra.mxu0 %v5594_v2  ;;  %4585 = vmatpush3.bf16.msra.mxu1 %v5594_v2  ;;  %v5316_v20 = vld [vmem:[#allocation2] sm:$0xff]   ;;  %v5318_v34 = vld [vmem:[#allocation2 + $0xb0] sm:$0xff]   ;;  %v4025_v35 = vld [vmem:[%s6184_s0 + $0x8] sm:$0xf] }
  0x15   :  { %4590 = vmatprep.subr.bf16.mxu0 %v5538_v0  ;;  %4610 = vmatprep.subr.bf16.mxu1 %v5538_v0  ;;  %v5319_v36 = vld [vmem:[#allocation2 + $0xa8] sm:$0xff]   ;;  %v5321_v38 = vld [vmem:[#allocation2 + $0xa0] sm:$0xff]   ;;  %v5320_v41 = vld [vmem:[#allocation2 + $0xf8] sm:$0xff]  }
  0x16   :  { %v5647_v37 = vld [vmem:[%s6185_s1 + $0x8] sm:$0xff]   ;;  %v5657_v39 = vld [vmem:[%s6185_s1] sm:$0xff]   ;;  %v5323_v42 = vld [vmem:[#allocation2 + $0x98] sm:$0xff]  }
  0x17   :  { %4579 = vmatmul.mubr.msk.bf16.vlgmr.msra.gmra.mxu0 %vm55_vm1, %v42_v3  ;;  %4587 = vmatmul.mubr.msk.bf16.vlgmr.msra.gmra.mxu1 %vm55_vm1, %v4007_v4  ;;  %v4035_v40 = vld [vmem:[%s6184_s0 + $0xc] sm:$0xf]  ;;  %v5322_v43 = vld [vmem:[#allocation2 + $0xf0] sm:$0xff]   ;;  %v5326_v46 = vld [vmem:[#allocation2 + $0xe0] sm:$0xff]  }
  0x18   :  { %4591 = vmatpush3.bf16.msra.mxu0 %v5301_v5  ;;  %4611 = vmatpush3.bf16.msra.mxu1 %v5302_v6  ;;  %v5324_v44 = vld [vmem:[#allocation2 + $0xe8] sm:$0xff]   ;;  %v5325_v45 = vld [vmem:[#allocation2 + $0x90] sm:$0xff]   ;;  %v5328_v48 = vld [vmem:[#allocation2 + $0xd8] sm:$0xff]  }
  0x19   :  { %4592 = vmatprep.subr.bf16.mxu0 %v5538_v0  ;;  %4612 = vmatprep.subr.bf16.mxu1 %v5538_v0  ;;  %v5327_v47 = vld [vmem:[#allocation2 + $0x88] sm:$0xff]   ;;  %v5329_v49 = vld [vmem:[#allocation2 + $0x80] sm:$0xff]   ;;  %v5330_v50 = vld [vmem:[#allocation2 + $0xd0] sm:$0xff]  }
  0x1a   :  { %4606 = vmatprep.mubr.msk.bf16.mxu0 %vm5539_vm0, %v5538_v0  ;;  %4626 = vmatprep.mubr.msk.bf16.mxu1 %vm5539_vm0, %v5538_v0  ;;  %v5331_v51 = vld [vmem:[#allocation2 + $0xc8] sm:$0xff]   ;;  %v5332_v52 = vld [vmem:[#allocation2 + $0xc0] sm:$0xff]  }
  0x1c   :  { %4593 = vmatpush3.bf16.msra.mxu0 %v5303_v7  ;;  %4613 = vmatpush3.bf16.msra.mxu1 %v5304_v8  ;;  %v4045_v7 = vld [vmem:[%s6184_s0 + $0x10] sm:$0xf] }
  0x1d   :  { %4594 = vmatprep.subr.bf16.mxu0 %v5538_v0  ;;  %4614 = vmatprep.subr.bf16.mxu1 %v5538_v0 }
  0x20   :  { %4595 = vmatpush3.bf16.msra.mxu0 %v5305_v9  ;;  %4615 = vmatpush3.bf16.msra.mxu1 %v5306_v10  ;;  %v5333_v10 = vld [vmem:[#allocation2 + $0x138] sm:$0xff]  }
  0x21   :  { %4596 = vmatprep.subr.bf16.mxu0 %v5538_v0  ;;  %4616 = vmatprep.subr.bf16.mxu1 %v5538_v0 }
  0x24   :  { %4597 = vmatpush3.bf16.msra.mxu0 %v5307_v11  ;;  %4617 = vmatpush3.bf16.msra.mxu1 %v5308_v12 }
  0x25   :  { %4598 = vmatprep.subr.bf16.mxu0 %v5538_v0  ;;  %4618 = vmatprep.subr.bf16.mxu1 %v5538_v0 }
  0x28   :  { %4599 = vmatpush3.bf16.msra.mxu0 %v5309_v13  ;;  %4619 = vmatpush3.bf16.msra.mxu1 %v5310_v14  ;;  %v5334_v13 = vld [vmem:[#allocation2 + $0x130] sm:$0xff]  }
  0x29   :  { %4600 = vmatprep.subr.bf16.mxu0 %v5538_v0  ;;  %4620 = vmatprep.subr.bf16.mxu1 %v5538_v0  ;;  %v4055_v14 = vld [vmem:[%s6184_s0 + $0x14] sm:$0xf] }
  0x2c   :  { %4601 = vmatpush3.bf16.msra.mxu0 %v5311_v15  ;;  %4621 = vmatpush3.bf16.msra.mxu1 %v5312_v16  ;;  %v5336_v15 = vld [vmem:[#allocation2 + $0x178] sm:$0xff]   ;;  %v5335_v16 = vld [vmem:[#allocation2 + $0x128] sm:$0xff]  }
  0x2d   :  { %4602 = vmatprep.subr.bf16.mxu0 %v5538_v0  ;;  %4622 = vmatprep.subr.bf16.mxu1 %v5538_v0 }
  0x30   :  { %4603 = vmatpush3.bf16.msra.mxu0 %v5313_v17  ;;  %4623 = vmatpush3.bf16.msra.mxu1 %v5314_v18  ;;  %v5338_v17 = vld [vmem:[#allocation2 + $0x170] sm:$0xff]   ;;  %v5337_v18 = vld [vmem:[#allocation2 + $0x120] sm:$0xff]  }
  0x31   :  { %4604 = vmatprep.subr.bf16.mxu0 %v5538_v0  ;;  %4624 = vmatprep.subr.bf16.mxu1 %v5538_v0 }
  0x34   :  { %4605 = vmatpush3.bf16.msra.mxu0 %v5315_v19  ;;  %4625 = vmatpush3.bf16.msra.mxu1 %v5316_v20  ;;  %v5340_v19 = vld [vmem:[#allocation2 + $0x168] sm:$0xff]   ;;  %v5339_v20 = vld [vmem:[#allocation2 + $0x118] sm:$0xff]  }
  0x35   :  { %4630 = vmatprep.subr.bf16.mxu0 %v5538_v0  ;;  %4638 = vmatprep.subr.bf16.mxu1 %v5538_v0 }
  0xd7   :  { %v93_v21 = vpop.f32.mrf.mxu0  ;;  %v156_v22 = vpop.f32.mrf.mxu1 }
  0xd8   :  { %v99_v23 = vmax.f32 %v93_v21, 0.0  ;;  %v162_v24 = vmax.f32 %v156_v22, 0.0  ;;  %v5341_v21 = vld [vmem:[#allocation2 + $0x110] sm:$0xff]   ;;  %v5342_v22 = vld [vmem:[#allocation2 + $0x160] sm:$0xff]  }
  0xd9   :  { %v4588_v25 = vpop.f32.mrf.mxu1  ;;  %v4580_v26 = vpop.f32.mrf.mxu0 }
  0xda   :  { %v100_v27 = vpack.c.bf16 %v99_v23, %v99_v23  ;;  %v163_v28 = vpack.c.bf16 %v162_v24, %v162_v24  ;;  %v5343_v23 = vld [vmem:[#allocation2 + $0x108] sm:$0xff]   ;;  %v5344_v24 = vld [vmem:[#allocation2 + $0x158] sm:$0xff]   ;;  %v5345_v25 = vld [vmem:[#allocation2 + $0x100] sm:$0xff]  }
  0xdb   :  { %v159_v30 = vpop.f32.mrf.mxu1  ;;  %v96_v31 = vpop.f32.mrf.mxu0  ;;  %v5346_v26 = vld [vmem:[#allocation2 + $0x150] sm:$0xff]  }
  0xdc   :  { %4607 = vmatmul.mubr.bf16.vlgmr.msra.gmra.mxu0 %v163_v28  ;;  %4627 = vmatmul.mubr.bf16.vlgmr.msra.gmra.mxu1 %v100_v27  ;;  %v5347_v27 = vld [vmem:[#allocation2 + $0x148] sm:$0xff]   ;;  %v5348_v28 = vld [vmem:[#allocation2 + $0x140] sm:$0xff]  }
  0xdd   :  { %4631 = vmatpush3.bf16.msra.mxu0 %v5587_v1  ;;  %v4589_v32 = vpop.f32.mrf.mxu1  ;;  %4634 = vmatprep.mubr.msk.bf16.mxu0 %vm5539_vm0, %v5538_v0  ;;  %v4581_v33 = vpop.f32.mrf.mxu0 }
  0xde   :  { %4632 = vmatprep.subr.bf16.mxu0 %v5538_v0  ;;  %4639 = vmatpush3.bf16.msra.mxu1 %v5317_v29 }
  0xdf   :  { %4640 = vmatprep.subr.bf16.mxu1 %v5538_v0  ;;  %4654 = vmatprep.mubr.msk.bf16.mxu1 %vm5539_vm0, %v5538_v0 }
  0xe1   :  { %4633 = vmatpush3.bf16.msra.mxu0 %v5594_v2 }
  0xe2   :  { %4658 = vmatprep.subr.bf16.mxu0 %v5538_v0  ;;  %4641 = vmatpush3.bf16.msra.mxu1 %v5318_v34 }
  0xe3   :  { %4642 = vmatprep.subr.bf16.mxu1 %v5538_v0 }
  0xe4   :  { %4635 = vmatmul.mubr.msk.bf16.vlgmr.msra.gmra.mxu0 %vm55_vm1, %v4025_v35 }
  0xe5   :  { %4659 = vmatpush3.bf16.msra.mxu0 %v5647_v37  ;;  %4662 = vmatprep.mubr.msk.bf16.mxu0 %vm5539_vm0, %v5538_v0 }
  0xe6   :  { %4660 = vmatprep.subr.bf16.mxu0 %v5538_v0  ;;  %4643 = vmatpush3.bf16.msra.mxu1 %v5319_v36 }
  0xe7   :  { %4644 = vmatprep.subr.bf16.mxu1 %v5538_v0 }
  0xe9   :  { %4661 = vmatpush3.bf16.msra.mxu0 %v5657_v39 }
  0xea   :  { %4666 = vmatprep.subr.bf16.mxu0 %v5538_v0  ;;  %4645 = vmatpush3.bf16.msra.mxu1 %v5321_v38 }
  0xeb   :  { %4646 = vmatprep.subr.bf16.mxu1 %v5538_v0 }
  0xec   :  { %4663 = vmatmul.mubr.msk.bf16.vlgmr.msra.gmra.mxu0 %vm55_vm1, %v4035_v40 }
  0xed   :  { %4667 = vmatpush3.bf16.msra.mxu0 %v5320_v41  ;;  %4682 = vmatprep.mubr.msk.bf16.mxu0 %vm5539_vm0, %v5538_v0 }
  0xee   :  { %4668 = vmatprep.subr.bf16.mxu0 %v5538_v0  ;;  %4647 = vmatpush3.bf16.msra.mxu1 %v5323_v42 }
  0xef   :  { %4648 = vmatprep.subr.bf16.mxu1 %v5538_v0 }
  0xf1   :  { %4669 = vmatpush3.bf16.msra.mxu0 %v5322_v43 }
  0xf2   :  { %4670 = vmatprep.subr.bf16.mxu0 %v5538_v0  ;;  %4649 = vmatpush3.bf16.msra.mxu1 %v5325_v45 }
  0xf3   :  { %4650 = vmatprep.subr.bf16.mxu1 %v5538_v0 }
  0xf5   :  { %4671 = vmatpush3.bf16.msra.mxu0 %v5324_v44 }
  0xf6   :  { %4672 = vmatprep.subr.bf16.mxu0 %v5538_v0  ;;  %4651 = vmatpush3.bf16.msra.mxu1 %v5327_v47 }
  0xf7   :  { %4652 = vmatprep.subr.bf16.mxu1 %v5538_v0 }
  0xf9   :  { %4673 = vmatpush3.bf16.msra.mxu0 %v5326_v46 }
  0xfa   :  { %4674 = vmatprep.subr.bf16.mxu0 %v5538_v0  ;;  %4653 = vmatpush3.bf16.msra.mxu1 %v5329_v49  ;;  %v4065_v49 = vld [vmem:[%s6184_s0 + $0x18] sm:$0xf] }
  0xfb   :  { %4686 = vmatprep.subr.bf16.mxu1 %v5538_v0 }
  0xfd   :  { %4675 = vmatpush3.bf16.msra.mxu0 %v5328_v48 }
  0xfe   :  { %4676 = vmatprep.subr.bf16.mxu0 %v5538_v0 }
 0x101   :  { %4677 = vmatpush3.bf16.msra.mxu0 %v5330_v50 }
 0x102   :  { %4678 = vmatprep.subr.bf16.mxu0 %v5538_v0 }
 0x105   :  { %4679 = vmatpush3.bf16.msra.mxu0 %v5331_v51 }
 0x106   :  { %4680 = vmatprep.subr.bf16.mxu0 %v5538_v0 }
 0x109   :  { %4681 = vmatpush3.bf16.msra.mxu0 %v5332_v52  ;;  %v5349_v52 = vld [vmem:[#allocation2 + $0x1b8] sm:$0xff]  }
 0x10a   :  { %4714 = vmatprep.subr.bf16.mxu0 %v5538_v0 }
 0x19c   :  { %v263_v53 = vpop.f32.mrf.mxu0  ;;  %v351_v54 = vpop.f32.mrf.mxu1 }
 0x19d   :  { %v5680_v55 = vadd.f32 %v351_v54, %v263_v53 }
 0x19e   :  { %v4608_v56 = vpop.f32.mrf.mxu0  ;;  %v4628_v57 = vpop.f32.mrf.mxu1 }
 0x19f   :  { %v4075_v56 = vld [vmem:[%s6184_s0 + $0x1c] sm:$0xf] }
 0x1a0   :  { %v266_v58 = vpop.f32.mrf.mxu0  ;;  %v354_v59 = vpop.f32.mrf.mxu1  ;;  %v5352_v57 = vld [vmem:[#allocation2 + $0x1f8] sm:$0xff]  }
 0x1a1   :  { %v5351_v58 = vld [vmem:[#allocation2 + $0x1a8] sm:$0xff]   ;;  %v5354_v59 = vld [vmem:[#allocation2 + $0x1f0] sm:$0xff]  }
 0x1a2   :  { %v4609_v60 = vpop.f32.mrf.mxu0  ;;  %v4629_v61 = vpop.f32.mrf.mxu1 }
 0x1a3   :  { %v5353_v60 = vld [vmem:[#allocation2 + $0x1a0] sm:$0xff]   ;;  %v5356_v61 = vld [vmem:[#allocation2 + $0x1e8] sm:$0xff]  }
 0x1a4   :  { %v396_v62 = vpop.f32.mrf.mxu0 }
 0x1a5   :  { %v402_v63 = vmax.f32 %v396_v62, 0.0  ;;  %v5355_v62 = vld [vmem:[#allocation2 + $0x198] sm:$0xff]  }
 0x1a6   :  { %v4636_v1 = vpop.f32.mrf.mxu0 }
 0x1a7   :  { %v403_v2 = vpack.c.bf16 %v402_v63, %v402_v63  ;;  %v5357_v63 = vld [vmem:[#allocation2 + $0x190] sm:$0xff]   ;;  %v5358_v1 = vld [vmem:[#allocation2 + $0x1e0] sm:$0xff]  }
 0x1a8   :  { %v399_v3 = vpop.f32.mrf.mxu0 }
 0x1a9   :  { %4655 = vmatmul.mubr.bf16.vlgmr.msra.gmra.mxu1 %v403_v2  ;;  %v5359_v2 = vld [vmem:[#allocation2 + $0x188] sm:$0xff]   ;;  %v5360_v3 = vld [vmem:[#allocation2 + $0x1d8] sm:$0xff]  }
 0x1aa   :  { %4687 = vmatpush3.bf16.msra.mxu1 %v5647_v37  ;;  %v4637_v4 = vpop.f32.mrf.mxu0  ;;  %4690 = vmatprep.mubr.msk.bf16.mxu1 %vm5539_vm0, %v5538_v0 }
 0x1ab   :  { %4688 = vmatprep.subr.bf16.mxu1 %v5538_v0  ;;  %v5361_v4 = vld [vmem:[#allocation2 + $0x180] sm:$0xff]  }
 0x1ac   :  { %v549_v5 = vpop.f32.mrf.mxu0 }
 0x1ad   :  { %v555_v6 = vmax.f32 %v549_v5, 0.0  ;;  %v5362_v5 = vld [vmem:[#allocation2 + $0x1d0] sm:$0xff]  }
 0x1ae   :  { %4689 = vmatpush3.bf16.msra.mxu1 %v5657_v39  ;;  %v4664_v8 = vpop.f32.mrf.mxu0 }
 0x1af   :  { %v556_v9 = vpack.c.bf16 %v555_v6, %v555_v6  ;;  %4694 = vmatprep.subr.bf16.mxu1 %v5538_v0  ;;  %v5363_v6 = vld [vmem:[#allocation2 + $0x1c8] sm:$0xff]  }
 0x1b0   :  { %v552_v11 = vpop.f32.mrf.mxu0 }
 0x1b1   :  { %4683 = vmatmul.mubr.bf16.vlgmr.msra.gmra.mxu0 %v556_v9  ;;  %4691 = vmatmul.mubr.msk.bf16.vlgmr.msra.gmra.mxu1 %vm55_vm1, %v4045_v7  ;;  %v5364_v7 = vld [vmem:[#allocation2 + $0x1c0] sm:$0xff]  }
 0x1b2   :  { %4715 = vmatpush3.bf16.msra.mxu0 %v5647_v37  ;;  %4718 = vmatprep.mubr.msk.bf16.mxu0 %vm5539_vm0, %v5538_v0  ;;  %v4665_v12 = vpop.f32.mrf.mxu0 }
 0x1b3   :  { %4716 = vmatprep.subr.bf16.mxu0 %v5538_v0  ;;  %4695 = vmatpush3.bf16.msra.mxu1 %v5333_v10 }
 0x1b4   :  { %4696 = vmatprep.subr.bf16.mxu1 %v5538_v0  ;;  %4710 = vmatprep.mubr.msk.bf16.mxu1 %vm5539_vm0, %v5538_v0 }
 0x1b6   :  { %4717 = vmatpush3.bf16.msra.mxu0 %v5657_v39 }
 0x1b7   :  { %4697 = vmatpush3.bf16.msra.mxu1 %v5334_v13  ;;  %4722 = vmatprep.subr.bf16.mxu0 %v5538_v0 }
 0x1b8   :  { %4698 = vmatprep.subr.bf16.mxu1 %v5538_v0 }
 0x1b9   :  { %4719 = vmatmul.mubr.msk.bf16.vlgmr.msra.gmra.mxu0 %vm55_vm1, %v4055_v14 }
 0x1ba   :  { %4723 = vmatpush3.bf16.msra.mxu0 %v5336_v15  ;;  %4738 = vmatprep.mubr.msk.bf16.mxu0 %vm5539_vm0, %v5538_v0 }
 0x1bb   :  { %4699 = vmatpush3.bf16.msra.mxu1 %v5335_v16  ;;  %4724 = vmatprep.subr.bf16.mxu0 %v5538_v0 }
 0x1bc   :  { %4700 = vmatprep.subr.bf16.mxu1 %v5538_v0 }
 0x1be   :  { %4725 = vmatpush3.bf16.msra.mxu0 %v5338_v17 }
 0x1bf   :  { %4701 = vmatpush3.bf16.msra.mxu1 %v5337_v18  ;;  %4726 = vmatprep.subr.bf16.mxu0 %v5538_v0 }
 0x1c0   :  { %4702 = vmatprep.subr.bf16.mxu1 %v5538_v0 }
 0x1c2   :  { %4727 = vmatpush3.bf16.msra.mxu0 %v5340_v19 }
 0x1c3   :  { %4703 = vmatpush3.bf16.msra.mxu1 %v5339_v20  ;;  %4728 = vmatprep.subr.bf16.mxu0 %v5538_v0 }
 0x1c4   :  { %4704 = vmatprep.subr.bf16.mxu1 %v5538_v0 }
 0x1c6   :  { %4729 = vmatpush3.bf16.msra.mxu0 %v5342_v22 }
 0x1c7   :  { %4705 = vmatpush3.bf16.msra.mxu1 %v5341_v21  ;;  %4730 = vmatprep.subr.bf16.mxu0 %v5538_v0 }
 0x1c8   :  { %4706 = vmatprep.subr.bf16.mxu1 %v5538_v0 }
 0x1ca   :  { %4731 = vmatpush3.bf16.msra.mxu0 %v5344_v24 }
 0x1cb   :  { %4707 = vmatpush3.bf16.msra.mxu1 %v5343_v23  ;;  %4732 = vmatprep.subr.bf16.mxu0 %v5538_v0 }
 0x1cc   :  { %4708 = vmatprep.subr.bf16.mxu1 %v5538_v0 }
 0x1ce   :  { %4733 = vmatpush3.bf16.msra.mxu0 %v5346_v26  ;;  %v4085_v26 = vld [vmem:[%s6184_s0 + $0x20] sm:$0xf] }
 0x1cf   :  { %4709 = vmatpush3.bf16.msra.mxu1 %v5345_v25  ;;  %4734 = vmatprep.subr.bf16.mxu0 %v5538_v0 }
 0x1d0   :  { %4742 = vmatprep.subr.bf16.mxu1 %v5538_v0 }
 0x1d2   :  { %4735 = vmatpush3.bf16.msra.mxu0 %v5347_v27 }
 0x1d3   :  { %4736 = vmatprep.subr.bf16.mxu0 %v5538_v0 }
 0x1d6   :  { %4737 = vmatpush3.bf16.msra.mxu0 %v5348_v28 }
 0x1d7   :  { %4770 = vmatprep.subr.bf16.mxu0 %v5538_v0 }
 0x269   :  { %v503_v29 = vpop.f32.mrf.mxu1 }
 0x26a   :  { %v509_v30 = vadd.f32 %v503_v29, %v5680_v55  ;;  %v5350_v55 = vld [vmem:[#allocation2 + $0x1b0] sm:$0xff]   ;;  %v5365_v29 = vld [vmem:[#allocation2 + $0x238] sm:$0xff]  }
 0x26b   :  { %v4656_v31 = vpop.f32.mrf.mxu1 }
 0x26d   :  { %v506_v32 = vpop.f32.mrf.mxu1 }
 0x26e   :  { %v5366_v32 = vld [vmem:[#allocation2 + $0x230] sm:$0xff]  }
 0x26f   :  { %v4657_v33 = vpop.f32.mrf.mxu1 }
 0x270   :  { %v4095_v33 = vld [vmem:[%s6184_s0 + $0x24] sm:$0xf] }
 0x271   :  { %v656_v34 = vpop.f32.mrf.mxu0  ;;  %v702_v35 = vpop.f32.mrf.mxu1 }
 0x272   :  { %v5723_v36 = vadd.f32 %v656_v34, %v509_v30  ;;  %v708_v38 = vmax.f32 %v702_v35, 0.0  ;;  %v5368_v34 = vld [vmem:[#allocation2 + $0x278] sm:$0xff]   ;;  %v5367_v35 = vld [vmem:[#allocation2 + $0x228] sm:$0xff]  }
 0x273   :  { %v4684_v40 = vpop.f32.mrf.mxu0  ;;  %v4692_v41 = vpop.f32.mrf.mxu1 }
 0x274   :  { %v709_v42 = vpack.c.bf16 %v708_v38, %v708_v38  ;;  %v5369_v38 = vld [vmem:[#allocation2 + $0x220] sm:$0xff]   ;;  %v5372_v40 = vld [vmem:[#allocation2 + $0x268] sm:$0xff]   ;;  %v5371_v41 = vld [vmem:[#allocation2 + $0x218] sm:$0xff]  }
 0x275   :  { %v659_v43 = vpop.f32.mrf.mxu0  ;;  %v705_v44 = vpop.f32.mrf.mxu1 }
 0x276   :  { %4711 = vmatmul.mubr.bf16.vlgmr.msra.gmra.mxu1 %v709_v42  ;;  %v5373_v42 = vld [vmem:[#allocation2 + $0x210] sm:$0xff]   ;;  %v5374_v43 = vld [vmem:[#allocation2 + $0x260] sm:$0xff]   ;;  %v5375_v44 = vld [vmem:[#allocation2 + $0x208] sm:$0xff]  }
 0x277   :  { %4743 = vmatpush3.bf16.msra.mxu1 %v5647_v37  ;;  %v4685_v45 = vpop.f32.mrf.mxu0  ;;  %v4693_v46 = vpop.f32.mrf.mxu1  ;;  %4746 = vmatprep.mubr.msk.bf16.mxu1 %vm5539_vm0, %v5538_v0 }
 0x278   :  { %4744 = vmatprep.subr.bf16.mxu1 %v5538_v0  ;;  %v5376_v45 = vld [vmem:[#allocation2 + $0x258] sm:$0xff]   ;;  %v5377_v46 = vld [vmem:[#allocation2 + $0x200] sm:$0xff]  }
 0x279   :  { %v855_v47 = vpop.f32.mrf.mxu0 }
 0x27a   :  { %v861_v48 = vmax.f32 %v855_v47, 0.0  ;;  %v5378_v47 = vld [vmem:[#allocation2 + $0x250] sm:$0xff]  }
 0x27b   :  { %4745 = vmatpush3.bf16.msra.mxu1 %v5657_v39  ;;  %v4720_v50 = vpop.f32.mrf.mxu0 }
 0x27c   :  { %v862_v51 = vpack.c.bf16 %v861_v48, %v861_v48  ;;  %4750 = vmatprep.subr.bf16.mxu1 %v5538_v0  ;;  %v5379_v48 = vld [vmem:[#allocation2 + $0x248] sm:$0xff]  }
 0x27d   :  { %v858_v53 = vpop.f32.mrf.mxu0 }
 0x27e   :  { %4739 = vmatmul.mubr.bf16.vlgmr.msra.gmra.mxu0 %v862_v51  ;;  %4747 = vmatmul.mubr.msk.bf16.vlgmr.msra.gmra.mxu1 %vm55_vm1, %v4065_v49  ;;  %v5380_v49 = vld [vmem:[#allocation2 + $0x240] sm:$0xff]  }
 0x27f   :  { %4771 = vmatpush3.bf16.msra.mxu0 %v5647_v37  ;;  %4774 = vmatprep.mubr.msk.bf16.mxu0 %vm5539_vm0, %v5538_v0  ;;  %v4721_v54 = vpop.f32.mrf.mxu0 }
 0x280   :  { %4772 = vmatprep.subr.bf16.mxu0 %v5538_v0  ;;  %4751 = vmatpush3.bf16.msra.mxu1 %v5349_v52 }
 0x281   :  { %4752 = vmatprep.subr.bf16.mxu1 %v5538_v0  ;;  %4766 = vmatprep.mubr.msk.bf16.mxu1 %vm5539_vm0, %v5538_v0 }
 0x283   :  { %4773 = vmatpush3.bf16.msra.mxu0 %v5657_v39 }
 0x284   :  { %4753 = vmatpush3.bf16.msra.mxu1 %v5350_v55  ;;  %4778 = vmatprep.subr.bf16.mxu0 %v5538_v0 }
 0x285   :  { %4754 = vmatprep.subr.bf16.mxu1 %v5538_v0 }
 0x286   :  { %4775 = vmatmul.mubr.msk.bf16.vlgmr.msra.gmra.mxu0 %vm55_vm1, %v4075_v56 }
 0x287   :  { %4779 = vmatpush3.bf16.msra.mxu0 %v5352_v57  ;;  %4794 = vmatprep.mubr.msk.bf16.mxu0 %vm5539_vm0, %v5538_v0 }
 0x288   :  { %4755 = vmatpush3.bf16.msra.mxu1 %v5351_v58  ;;  %4780 = vmatprep.subr.bf16.mxu0 %v5538_v0 }
 0x289   :  { %4756 = vmatprep.subr.bf16.mxu1 %v5538_v0 }
 0x28b   :  { %4781 = vmatpush3.bf16.msra.mxu0 %v5354_v59 }
 0x28c   :  { %4757 = vmatpush3.bf16.msra.mxu1 %v5353_v60  ;;  %4782 = vmatprep.subr.bf16.mxu0 %v5538_v0 }
 0x28d   :  { %4758 = vmatprep.subr.bf16.mxu1 %v5538_v0 }
 0x28f   :  { %4783 = vmatpush3.bf16.msra.mxu0 %v5356_v61 }
 0x290   :  { %4759 = vmatpush3.bf16.msra.mxu1 %v5355_v62  ;;  %4784 = vmatprep.subr.bf16.mxu0 %v5538_v0 }
 0x291   :  { %4760 = vmatprep.subr.bf16.mxu1 %v5538_v0 }
 0x293   :  { %4785 = vmatpush3.bf16.msra.mxu0 %v5358_v1 }
 0x294   :  { %4761 = vmatpush3.bf16.msra.mxu1 %v5357_v63  ;;  %4786 = vmatprep.subr.bf16.mxu0 %v5538_v0 }
 0x295   :  { %4762 = vmatprep.subr.bf16.mxu1 %v5538_v0 }
 0x297   :  { %4787 = vmatpush3.bf16.msra.mxu0 %v5360_v3 }
 0x298   :  { %4763 = vmatpush3.bf16.msra.mxu1 %v5359_v2  ;;  %4788 = vmatprep.subr.bf16.mxu0 %v5538_v0 }
 0x299   :  { %4764 = vmatprep.subr.bf16.mxu1 %v5538_v0 }
 0x29b   :  { %4789 = vmatpush3.bf16.msra.mxu0 %v5362_v5  ;;  %v4105_v5 = vld [vmem:[%s6184_s0 + $0x28] sm:$0xf] }
 0x29c   :  { %4765 = vmatpush3.bf16.msra.mxu1 %v5361_v4  ;;  %4790 = vmatprep.subr.bf16.mxu0 %v5538_v0 }
 0x29d   :  { %4798 = vmatprep.subr.bf16.mxu1 %v5538_v0 }
 0x29f   :  { %4791 = vmatpush3.bf16.msra.mxu0 %v5363_v6 }
 0x2a0   :  { %4792 = vmatprep.subr.bf16.mxu0 %v5538_v0 }
 0x2a3   :  { %4793 = vmatpush3.bf16.msra.mxu0 %v5364_v7 }
 0x2a4   :  { %4826 = vmatprep.subr.bf16.mxu0 %v5538_v0 }
 0x336   :  { %v809_v8 = vpop.f32.mrf.mxu1 }
 0x337   :  { %v815_v9 = vadd.f32 %v809_v8, %v5723_v36  ;;  %v5370_v36 = vld [vmem:[#allocation2 + $0x270] sm:$0xff]   ;;  %v5381_v8 = vld [vmem:[#allocation2 + $0x2b8] sm:$0xff]  }
 0x338   :  { %v4712_v10 = vpop.f32.mrf.mxu1 }
 0x33a   :  { %v812_v11 = vpop.f32.mrf.mxu1 }
 0x33b   :  { %v5382_v11 = vld [vmem:[#allocation2 + $0x2b0] sm:$0xff]  }
 0x33c   :  { %v4713_v12 = vpop.f32.mrf.mxu1 }
 0x33d   :  { %v4115_v12 = vld [vmem:[%s6184_s0 + $0x2c] sm:$0xf] }
 0x33e   :  { %v962_v13 = vpop.f32.mrf.mxu0  ;;  %v1008_v14 = vpop.f32.mrf.mxu1 }
 0x33f   :  { %v5766_v15 = vadd.f32 %v962_v13, %v815_v9  ;;  %v1014_v16 = vmax.f32 %v1008_v14, 0.0  ;;  %v5384_v13 = vld [vmem:[#allocation2 + $0x2f8] sm:$0xff]   ;;  %v5383_v14 = vld [vmem:[#allocation2 + $0x2a8] sm:$0xff]  }
 0x340   :  { %v4740_v17 = vpop.f32.mrf.mxu0  ;;  %v4748_v18 = vpop.f32.mrf.mxu1 }
 0x341   :  { %v1015_v19 = vpack.c.bf16 %v1014_v16, %v1014_v16  ;;  %v5385_v16 = vld [vmem:[#allocation2 + $0x2a0] sm:$0xff]   ;;  %v5388_v17 = vld [vmem:[#allocation2 + $0x2e8] sm:$0xff]   ;;  %v5387_v18 = vld [vmem:[#allocation2 + $0x298] sm:$0xff]  }
 0x342   :  { %v965_v20 = vpop.f32.mrf.mxu0  ;;  %v1011_v21 = vpop.f32.mrf.mxu1 }
 0x343   :  { %4767 = vmatmul.mubr.bf16.vlgmr.msra.gmra.mxu1 %v1015_v19  ;;  %v5389_v19 = vld [vmem:[#allocation2 + $0x290] sm:$0xff]   ;;  %v5390_v20 = vld [vmem:[#allocation2 + $0x2e0] sm:$0xff]   ;;  %v5391_v21 = vld [vmem:[#allocation2 + $0x288] sm:$0xff]  }
 0x344   :  { %4799 = vmatpush3.bf16.msra.mxu1 %v5647_v37  ;;  %v4741_v22 = vpop.f32.mrf.mxu0  ;;  %v4749_v23 = vpop.f32.mrf.mxu1  ;;  %4802 = vmatprep.mubr.msk.bf16.mxu1 %vm5539_vm0, %v5538_v0 }
 0x345   :  { %4800 = vmatprep.subr.bf16.mxu1 %v5538_v0  ;;  %v5392_v22 = vld [vmem:[#allocation2 + $0x2d8] sm:$0xff]   ;;  %v5393_v23 = vld [vmem:[#allocation2 + $0x280] sm:$0xff]  }
 0x346   :  { %v1161_v24 = vpop.f32.mrf.mxu0 }
 0x347   :  { %v1167_v25 = vmax.f32 %v1161_v24, 0.0  ;;  %v5394_v24 = vld [vmem:[#allocation2 + $0x2d0] sm:$0xff]  }
 0x348   :  { %4801 = vmatpush3.bf16.msra.mxu1 %v5657_v39  ;;  %v4776_v27 = vpop.f32.mrf.mxu0 }
 0x349   :  { %v1168_v28 = vpack.c.bf16 %v1167_v25, %v1167_v25  ;;  %4806 = vmatprep.subr.bf16.mxu1 %v5538_v0  ;;  %v5395_v25 = vld [vmem:[#allocation2 + $0x2c8] sm:$0xff]  }
 0x34a   :  { %v1164_v30 = vpop.f32.mrf.mxu0 }
 0x34b   :  { %4795 = vmatmul.mubr.bf16.vlgmr.msra.gmra.mxu0 %v1168_v28  ;;  %4803 = vmatmul.mubr.msk.bf16.vlgmr.msra.gmra.mxu1 %vm55_vm1, %v4085_v26  ;;  %v5396_v26 = vld [vmem:[#allocation2 + $0x2c0] sm:$0xff]  }
 0x34c   :  { %4827 = vmatpush3.bf16.msra.mxu0 %v5647_v37  ;;  %4830 = vmatprep.mubr.msk.bf16.mxu0 %vm5539_vm0, %v5538_v0  ;;  %v4777_v31 = vpop.f32.mrf.mxu0 }
 0x34d   :  { %4828 = vmatprep.subr.bf16.mxu0 %v5538_v0  ;;  %4807 = vmatpush3.bf16.msra.mxu1 %v5365_v29 }
 0x34e   :  { %4808 = vmatprep.subr.bf16.mxu1 %v5538_v0  ;;  %4822 = vmatprep.mubr.msk.bf16.mxu1 %vm5539_vm0, %v5538_v0 }
 0x350   :  { %4829 = vmatpush3.bf16.msra.mxu0 %v5657_v39 }
 0x351   :  { %4809 = vmatpush3.bf16.msra.mxu1 %v5366_v32  ;;  %4834 = vmatprep.subr.bf16.mxu0 %v5538_v0 }
 0x352   :  { %4810 = vmatprep.subr.bf16.mxu1 %v5538_v0 }
 0x353   :  { %4831 = vmatmul.mubr.msk.bf16.vlgmr.msra.gmra.mxu0 %vm55_vm1, %v4095_v33 }
 0x354   :  { %4835 = vmatpush3.bf16.msra.mxu0 %v5368_v34  ;;  %4850 = vmatprep.mubr.msk.bf16.mxu0 %vm5539_vm0, %v5538_v0 }
 0x355   :  { %4811 = vmatpush3.bf16.msra.mxu1 %v5367_v35  ;;  %4836 = vmatprep.subr.bf16.mxu0 %v5538_v0 }
 0x356   :  { %4812 = vmatprep.subr.bf16.mxu1 %v5538_v0 }
 0x358   :  { %4837 = vmatpush3.bf16.msra.mxu0 %v5370_v36 }
 0x359   :  { %4813 = vmatpush3.bf16.msra.mxu1 %v5369_v38  ;;  %4838 = vmatprep.subr.bf16.mxu0 %v5538_v0 }
 0x35a   :  { %4814 = vmatprep.subr.bf16.mxu1 %v5538_v0 }
 0x35c   :  { %4839 = vmatpush3.bf16.msra.mxu0 %v5372_v40 }
 0x35d   :  { %4815 = vmatpush3.bf16.msra.mxu1 %v5371_v41  ;;  %4840 = vmatprep.subr.bf16.mxu0 %v5538_v0 }
 0x35e   :  { %4816 = vmatprep.subr.bf16.mxu1 %v5538_v0 }
 0x360   :  { %4841 = vmatpush3.bf16.msra.mxu0 %v5374_v43 }
 0x361   :  { %4817 = vmatpush3.bf16.msra.mxu1 %v5373_v42  ;;  %4842 = vmatprep.subr.bf16.mxu0 %v5538_v0 }
 0x362   :  { %4818 = vmatprep.subr.bf16.mxu1 %v5538_v0 }
 0x364   :  { %4843 = vmatpush3.bf16.msra.mxu0 %v5376_v45 }
 0x365   :  { %4819 = vmatpush3.bf16.msra.mxu1 %v5375_v44  ;;  %4844 = vmatprep.subr.bf16.mxu0 %v5538_v0 }
 0x366   :  { %4820 = vmatprep.subr.bf16.mxu1 %v5538_v0 }
 0x368   :  { %4845 = vmatpush3.bf16.msra.mxu0 %v5378_v47  ;;  %v4125_v47 = vld [vmem:[%s6184_s0 + $0x30] sm:$0xf] }
 0x369   :  { %4821 = vmatpush3.bf16.msra.mxu1 %v5377_v46  ;;  %4846 = vmatprep.subr.bf16.mxu0 %v5538_v0 }
 0x36a   :  { %4854 = vmatprep.subr.bf16.mxu1 %v5538_v0 }
 0x36c   :  { %4847 = vmatpush3.bf16.msra.mxu0 %v5379_v48 }
 0x36d   :  { %4848 = vmatprep.subr.bf16.mxu0 %v5538_v0 }
 0x370   :  { %4849 = vmatpush3.bf16.msra.mxu0 %v5380_v49 }
 0x371   :  { %4882 = vmatprep.subr.bf16.mxu0 %v5538_v0 }
 0x403   :  { %v1115_v50 = vpop.f32.mrf.mxu1 }
 0x404   :  { %v1121_v51 = vadd.f32 %v1115_v50, %v5766_v15  ;;  %v5386_v15 = vld [vmem:[#allocation2 + $0x2f0] sm:$0xff]   ;;  %v5397_v50 = vld [vmem:[#allocation2 + $0x338] sm:$0xff]  }
 0x405   :  { %v4768_v52 = vpop.f32.mrf.mxu1 }
 0x407   :  { %v1118_v53 = vpop.f32.mrf.mxu1 }
 0x408   :  { %v5398_v53 = vld [vmem:[#allocation2 + $0x330] sm:$0xff]  }
 0x409   :  { %v4769_v54 = vpop.f32.mrf.mxu1 }
 0x40a   :  { %v4135_v54 = vld [vmem:[%s6184_s0 + $0x34] sm:$0xf] }
 0x40b   :  { %v1268_v55 = vpop.f32.mrf.mxu0  ;;  %v1314_v56 = vpop.f32.mrf.mxu1 }
 0x40c   :  { %v5809_v57 = vadd.f32 %v1268_v55, %v1121_v51  ;;  %v1320_v58 = vmax.f32 %v1314_v56, 0.0  ;;  %v5400_v55 = vld [vmem:[#allocation2 + $0x378] sm:$0xff]   ;;  %v5399_v56 = vld [vmem:[#allocation2 + $0x328] sm:$0xff]  }
 0x40d   :  { %v4796_v59 = vpop.f32.mrf.mxu0  ;;  %v4804_v60 = vpop.f32.mrf.mxu1 }
 0x40e   :  { %v1321_v61 = vpack.c.bf16 %v1320_v58, %v1320_v58  ;;  %v5401_v58 = vld [vmem:[#allocation2 + $0x320] sm:$0xff]   ;;  %v5404_v59 = vld [vmem:[#allocation2 + $0x368] sm:$0xff]   ;;  %v5403_v60 = vld [vmem:[#allocation2 + $0x318] sm:$0xff]  }
 0x40f   :  { %v1271_v62 = vpop.f32.mrf.mxu0  ;;  %v1317_v63 = vpop.f32.mrf.mxu1 }
 0x410   :  { %4823 = vmatmul.mubr.bf16.vlgmr.msra.gmra.mxu1 %v1321_v61  ;;  %v5405_v61 = vld [vmem:[#allocation2 + $0x310] sm:$0xff]   ;;  %v5406_v62 = vld [vmem:[#allocation2 + $0x360] sm:$0xff]   ;;  %v5407_v63 = vld [vmem:[#allocation2 + $0x308] sm:$0xff]  }
 0x411   :  { %4855 = vmatpush3.bf16.msra.mxu1 %v5647_v37  ;;  %v4797_v1 = vpop.f32.mrf.mxu0  ;;  %v4805_v2 = vpop.f32.mrf.mxu1  ;;  %4858 = vmatprep.mubr.msk.bf16.mxu1 %vm5539_vm0, %v5538_v0 }
 0x412   :  { %4856 = vmatprep.subr.bf16.mxu1 %v5538_v0  ;;  %v5408_v1 = vld [vmem:[#allocation2 + $0x358] sm:$0xff]   ;;  %v5409_v2 = vld [vmem:[#allocation2 + $0x300] sm:$0xff]  }
 0x413   :  { %v1467_v3 = vpop.f32.mrf.mxu0 }
 0x414   :  { %v1473_v4 = vmax.f32 %v1467_v3, 0.0  ;;  %v5410_v3 = vld [vmem:[#allocation2 + $0x350] sm:$0xff]  }
 0x415   :  { %4857 = vmatpush3.bf16.msra.mxu1 %v5657_v39  ;;  %v4832_v6 = vpop.f32.mrf.mxu0 }
 0x416   :  { %v1474_v7 = vpack.c.bf16 %v1473_v4, %v1473_v4  ;;  %4862 = vmatprep.subr.bf16.mxu1 %v5538_v0  ;;  %v5411_v4 = vld [vmem:[#allocation2 + $0x348] sm:$0xff]  }
 0x417   :  { %v1470_v9 = vpop.f32.mrf.mxu0 }
 0x418   :  { %4851 = vmatmul.mubr.bf16.vlgmr.msra.gmra.mxu0 %v1474_v7  ;;  %4859 = vmatmul.mubr.msk.bf16.vlgmr.msra.gmra.mxu1 %vm55_vm1, %v4105_v5  ;;  %v5412_v5 = vld [vmem:[#allocation2 + $0x340] sm:$0xff]  }
 0x419   :  { %4883 = vmatpush3.bf16.msra.mxu0 %v5647_v37  ;;  %4886 = vmatprep.mubr.msk.bf16.mxu0 %vm5539_vm0, %v5538_v0  ;;  %v4833_v10 = vpop.f32.mrf.mxu0 }
 0x41a   :  { %4884 = vmatprep.subr.bf16.mxu0 %v5538_v0  ;;  %4863 = vmatpush3.bf16.msra.mxu1 %v5381_v8 }
 0x41b   :  { %4864 = vmatprep.subr.bf16.mxu1 %v5538_v0  ;;  %4878 = vmatprep.mubr.msk.bf16.mxu1 %vm5539_vm0, %v5538_v0 }
 0x41d   :  { %4885 = vmatpush3.bf16.msra.mxu0 %v5657_v39 }
 0x41e   :  { %4865 = vmatpush3.bf16.msra.mxu1 %v5382_v11  ;;  %4890 = vmatprep.subr.bf16.mxu0 %v5538_v0 }
 0x41f   :  { %4866 = vmatprep.subr.bf16.mxu1 %v5538_v0 }
 0x420   :  { %4887 = vmatmul.mubr.msk.bf16.vlgmr.msra.gmra.mxu0 %vm55_vm1, %v4115_v12 }
 0x421   :  { %4891 = vmatpush3.bf16.msra.mxu0 %v5384_v13  ;;  %4906 = vmatprep.mubr.msk.bf16.mxu0 %vm5539_vm0, %v5538_v0 }
 0x422   :  { %4867 = vmatpush3.bf16.msra.mxu1 %v5383_v14  ;;  %4892 = vmatprep.subr.bf16.mxu0 %v5538_v0 }
 0x423   :  { %4868 = vmatprep.subr.bf16.mxu1 %v5538_v0 }
 0x425   :  { %4893 = vmatpush3.bf16.msra.mxu0 %v5386_v15 }
 0x426   :  { %4869 = vmatpush3.bf16.msra.mxu1 %v5385_v16  ;;  %4894 = vmatprep.subr.bf16.mxu0 %v5538_v0 }
 0x427   :  { %4870 = vmatprep.subr.bf16.mxu1 %v5538_v0 }
 0x429   :  { %4895 = vmatpush3.bf16.msra.mxu0 %v5388_v17 }
 0x42a   :  { %4871 = vmatpush3.bf16.msra.mxu1 %v5387_v18  ;;  %4896 = vmatprep.subr.bf16.mxu0 %v5538_v0 }
 0x42b   :  { %4872 = vmatprep.subr.bf16.mxu1 %v5538_v0 }
 0x42d   :  { %4897 = vmatpush3.bf16.msra.mxu0 %v5390_v20 }
 0x42e   :  { %4873 = vmatpush3.bf16.msra.mxu1 %v5389_v19  ;;  %4898 = vmatprep.subr.bf16.mxu0 %v5538_v0 }
 0x42f   :  { %4874 = vmatprep.subr.bf16.mxu1 %v5538_v0 }
 0x431   :  { %4899 = vmatpush3.bf16.msra.mxu0 %v5392_v22 }
 0x432   :  { %4875 = vmatpush3.bf16.msra.mxu1 %v5391_v21  ;;  %4900 = vmatprep.subr.bf16.mxu0 %v5538_v0 }
 0x433   :  { %4876 = vmatprep.subr.bf16.mxu1 %v5538_v0 }
 0x435   :  { %4901 = vmatpush3.bf16.msra.mxu0 %v5394_v24  ;;  %v4145_v24 = vld [vmem:[%s6184_s0 + $0x38] sm:$0xf] }
 0x436   :  { %4877 = vmatpush3.bf16.msra.mxu1 %v5393_v23  ;;  %4902 = vmatprep.subr.bf16.mxu0 %v5538_v0 }
 0x437   :  { %4910 = vmatprep.subr.bf16.mxu1 %v5538_v0 }
 0x439   :  { %4903 = vmatpush3.bf16.msra.mxu0 %v5395_v25 }
 0x43a   :  { %4904 = vmatprep.subr.bf16.mxu0 %v5538_v0 }
 0x43d   :  { %4905 = vmatpush3.bf16.msra.mxu0 %v5396_v26 }
 0x43e   :  { %4938 = vmatprep.subr.bf16.mxu0 %v5538_v0 }
 0x4d0   :  { %v1421_v27 = vpop.f32.mrf.mxu1 }
 0x4d1   :  { %v1427_v28 = vadd.f32 %v1421_v27, %v5809_v57  ;;  %v5402_v57 = vld [vmem:[#allocation2 + $0x370] sm:$0xff]  }
 0x4d2   :  { %v4824_v29 = vpop.f32.mrf.mxu1 }
 0x4d3   :  { %v5414_v29 = vld [vmem:[#allocation2 + $0x3b0] sm:$0xff]  }
 0x4d4   :  { %v1424_v30 = vpop.f32.mrf.mxu1 }
 0x4d5   :  { %v5922_v30 = vld [vmem:[%s6185_s1] sm:$0xff]  }
 0x4d6   :  { %v4825_v31 = vpop.f32.mrf.mxu1 }
 0x4d7   :  { %v4155_v31 = vld [vmem:[%s6184_s0 + $0x3c] sm:$0xf] }
 0x4d8   :  { %v1574_v32 = vpop.f32.mrf.mxu0  ;;  %v1620_v33 = vpop.f32.mrf.mxu1 }
 0x4d9   :  { %v5852_v34 = vadd.f32 %v1574_v32, %v1427_v28  ;;  %v1626_v35 = vmax.f32 %v1620_v33, 0.0  ;;  %v5910_v28 = vld [vmem:[%s6185_s1 + $0x8] sm:$0xff]   ;;  %v5416_v32 = vld [vmem:[#allocation2 + $0x3f8] sm:$0xff]  }
 0x4da   :  { %v4852_v36 = vpop.f32.mrf.mxu0  ;;  %v4860_v38 = vpop.f32.mrf.mxu1  ;;  %v5415_v33 = vld [vmem:[#allocation2 + $0x3a8] sm:$0xff]  }
 0x4db   :  { %v1627_v40 = vpack.c.bf16 %v1626_v35, %v1626_v35  ;;  %v5417_v35 = vld [vmem:[#allocation2 + $0x3a0] sm:$0xff]   ;;  %v5420_v36 = vld [vmem:[#allocation2 + $0x3e8] sm:$0xff]   ;;  %v5419_v38 = vld [vmem:[#allocation2 + $0x398] sm:$0xff]  }
 0x4dc   :  { %v1577_v41 = vpop.f32.mrf.mxu0  ;;  %v1623_v42 = vpop.f32.mrf.mxu1 }
 0x4dd   :  { %4879 = vmatmul.mubr.bf16.vlgmr.msra.gmra.mxu1 %v1627_v40  ;;  %v5421_v40 = vld [vmem:[#allocation2 + $0x390] sm:$0xff]   ;;  %v5422_v41 = vld [vmem:[#allocation2 + $0x3e0] sm:$0xff]   ;;  %v5423_v42 = vld [vmem:[#allocation2 + $0x388] sm:$0xff]  }
 0x4de   :  { %4911 = vmatpush3.bf16.msra.mxu1 %v5647_v37  ;;  %v4853_v43 = vpop.f32.mrf.mxu0  ;;  %v4861_v44 = vpop.f32.mrf.mxu1  ;;  %4914 = vmatprep.mubr.msk.bf16.mxu1 %vm5539_vm0, %v5538_v0 }
 0x4df   :  { %4912 = vmatprep.subr.bf16.mxu1 %v5538_v0  ;;  %v5424_v43 = vld [vmem:[#allocation2 + $0x3d8] sm:$0xff]   ;;  %v5425_v44 = vld [vmem:[#allocation2 + $0x380] sm:$0xff]  }
 0x4e0   :  { %v1773_v45 = vpop.f32.mrf.mxu0 }
 0x4e1   :  { %v1779_v46 = vmax.f32 %v1773_v45, 0.0  ;;  %v5426_v45 = vld [vmem:[#allocation2 + $0x3d0] sm:$0xff]  }
 0x4e2   :  { %4913 = vmatpush3.bf16.msra.mxu1 %v5657_v39  ;;  %v4888_v48 = vpop.f32.mrf.mxu0 }
 0x4e3   :  { %v1780_v49 = vpack.c.bf16 %v1779_v46, %v1779_v46  ;;  %4918 = vmatprep.subr.bf16.mxu1 %v5538_v0  ;;  %v5427_v46 = vld [vmem:[#allocation2 + $0x3c8] sm:$0xff]  }
 0x4e4   :  { %v1776_v51 = vpop.f32.mrf.mxu0 }
 0x4e5   :  { %4907 = vmatmul.mubr.bf16.vlgmr.msra.gmra.mxu0 %v1780_v49  ;;  %4915 = vmatmul.mubr.msk.bf16.vlgmr.msra.gmra.mxu1 %vm55_vm1, %v4125_v47  ;;  %v5428_v47 = vld [vmem:[#allocation2 + $0x3c0] sm:$0xff]  }
 0x4e6   :  { %4939 = vmatpush3.bf16.msra.mxu0 %v5647_v37  ;;  %4942 = vmatprep.mubr.msk.bf16.mxu0 %vm5539_vm0, %v5538_v0  ;;  %v4889_v52 = vpop.f32.mrf.mxu0 }
 0x4e7   :  { %4940 = vmatprep.subr.bf16.mxu0 %v5538_v0  ;;  %4919 = vmatpush3.bf16.msra.mxu1 %v5397_v50 }
 0x4e8   :  { %4920 = vmatprep.subr.bf16.mxu1 %v5538_v0  ;;  %4934 = vmatprep.mubr.msk.bf16.mxu1 %vm5539_vm0, %v5538_v0 }
 0x4ea   :  { %4941 = vmatpush3.bf16.msra.mxu0 %v5657_v39 }
 0x4eb   :  { %4921 = vmatpush3.bf16.msra.mxu1 %v5398_v53  ;;  %4946 = vmatprep.subr.bf16.mxu0 %v5538_v0 }
 0x4ec   :  { %4922 = vmatprep.subr.bf16.mxu1 %v5538_v0 }
 0x4ed   :  { %4943 = vmatmul.mubr.msk.bf16.vlgmr.msra.gmra.mxu0 %vm55_vm1, %v4135_v54 }
 0x4ee   :  { %4947 = vmatpush3.bf16.msra.mxu0 %v5400_v55  ;;  %4962 = vmatprep.mubr.msk.bf16.mxu0 %vm5539_vm0, %v5538_v0 }
 0x4ef   :  { %4923 = vmatpush3.bf16.msra.mxu1 %v5399_v56  ;;  %4948 = vmatprep.subr.bf16.mxu0 %v5538_v0 }
 0x4f0   :  { %4924 = vmatprep.subr.bf16.mxu1 %v5538_v0 }
 0x4f2   :  { %4949 = vmatpush3.bf16.msra.mxu0 %v5402_v57 }
 0x4f3   :  { %4925 = vmatpush3.bf16.msra.mxu1 %v5401_v58  ;;  %4950 = vmatprep.subr.bf16.mxu0 %v5538_v0 }
 0x4f4   :  { %4926 = vmatprep.subr.bf16.mxu1 %v5538_v0 }
 0x4f6   :  { %4951 = vmatpush3.bf16.msra.mxu0 %v5404_v59 }
 0x4f7   :  { %4927 = vmatpush3.bf16.msra.mxu1 %v5403_v60  ;;  %4952 = vmatprep.subr.bf16.mxu0 %v5538_v0 }
 0x4f8   :  { %4928 = vmatprep.subr.bf16.mxu1 %v5538_v0 }
 0x4fa   :  { %4953 = vmatpush3.bf16.msra.mxu0 %v5406_v62 }
 0x4fb   :  { %4929 = vmatpush3.bf16.msra.mxu1 %v5405_v61  ;;  %4954 = vmatprep.subr.bf16.mxu0 %v5538_v0 }
 0x4fc   :  { %4930 = vmatprep.subr.bf16.mxu1 %v5538_v0 }
 0x4fe   :  { %4955 = vmatpush3.bf16.msra.mxu0 %v5408_v1 }
 0x4ff   :  { %4931 = vmatpush3.bf16.msra.mxu1 %v5407_v63  ;;  %4956 = vmatprep.subr.bf16.mxu0 %v5538_v0 }
 0x500   :  { %4932 = vmatprep.subr.bf16.mxu1 %v5538_v0 }
 0x502   :  { %4957 = vmatpush3.bf16.msra.mxu0 %v5410_v3  ;;  %v4165_v3 = vld [vmem:[%s6184_s0 + $0x40] sm:$0xf] }
 0x503   :  { %4933 = vmatpush3.bf16.msra.mxu1 %v5409_v2  ;;  %4958 = vmatprep.subr.bf16.mxu0 %v5538_v0 }
 0x504   :  { %4966 = vmatprep.subr.bf16.mxu1 %v5538_v0 }
 0x506   :  { %4959 = vmatpush3.bf16.msra.mxu0 %v5411_v4 }
 0x507   :  { %4960 = vmatprep.subr.bf16.mxu0 %v5538_v0 }
 0x50a   :  { %4961 = vmatpush3.bf16.msra.mxu0 %v5412_v5 }
 0x50b   :  { %4994 = vmatprep.subr.bf16.mxu0 %v5538_v0 }
 0x59d   :  { %v1727_v6 = vpop.f32.mrf.mxu1 }
 0x59e   :  { %v1733_v7 = vadd.f32 %v1727_v6, %v5852_v34  ;;  %v5418_v34 = vld [vmem:[#allocation2 + $0x3f0] sm:$0xff]   ;;  %v5429_v6 = vld [vmem:[#allocation2 + $0x438] sm:$0xff]  }
 0x59f   :  { %v4880_v8 = vpop.f32.mrf.mxu1 }
 0x5a1   :  { %v1730_v9 = vpop.f32.mrf.mxu1 }
 0x5a2   :  { %v5430_v9 = vld [vmem:[#allocation2 + $0x430] sm:$0xff]  }
 0x5a3   :  { %v4881_v10 = vpop.f32.mrf.mxu1 }
 0x5a4   :  { %v4175_v10 = vld [vmem:[%s6184_s0 + $0x44] sm:$0xf] }
 0x5a5   :  { %v1880_v11 = vpop.f32.mrf.mxu0  ;;  %v1926_v12 = vpop.f32.mrf.mxu1 }
 0x5a6   :  { %v5895_v13 = vadd.f32 %v1880_v11, %v1733_v7  ;;  %v1932_v14 = vmax.f32 %v1926_v12, 0.0  ;;  %v5432_v11 = vld [vmem:[#allocation2 + $0x478] sm:$0xff]   ;;  %v5431_v12 = vld [vmem:[#allocation2 + $0x428] sm:$0xff]  }
 0x5a7   :  { %v4908_v15 = vpop.f32.mrf.mxu0  ;;  %v4916_v16 = vpop.f32.mrf.mxu1 }
 0x5a8   :  { %v1933_v17 = vpack.c.bf16 %v1932_v14, %v1932_v14  ;;  %v5433_v14 = vld [vmem:[#allocation2 + $0x420] sm:$0xff]   ;;  %v5436_v15 = vld [vmem:[#allocation2 + $0x468] sm:$0xff]   ;;  %v5435_v16 = vld [vmem:[#allocation2 + $0x418] sm:$0xff]  }
 0x5a9   :  { %v1883_v18 = vpop.f32.mrf.mxu0  ;;  %v1929_v19 = vpop.f32.mrf.mxu1 }
 0x5aa   :  { %4935 = vmatmul.mubr.bf16.vlgmr.msra.gmra.mxu1 %v1933_v17  ;;  %v5437_v17 = vld [vmem:[#allocation2 + $0x410] sm:$0xff]   ;;  %v5438_v18 = vld [vmem:[#allocation2 + $0x460] sm:$0xff]   ;;  %v5439_v19 = vld [vmem:[#allocation2 + $0x408] sm:$0xff]  }
 0x5ab   :  { %4967 = vmatpush3.bf16.msra.mxu1 %v5647_v37  ;;  %v4909_v20 = vpop.f32.mrf.mxu0  ;;  %v4917_v21 = vpop.f32.mrf.mxu1  ;;  %4970 = vmatprep.mubr.msk.bf16.mxu1 %vm5539_vm0, %v5538_v0  ;;  %v5413_v37 = vld [vmem:[#allocation2 + $0x3b8] sm:$0xff]  }
 0x5ac   :  { %4968 = vmatprep.subr.bf16.mxu1 %v5538_v0  ;;  %v5440_v20 = vld [vmem:[#allocation2 + $0x458] sm:$0xff]   ;;  %v5441_v21 = vld [vmem:[#allocation2 + $0x400] sm:$0xff]  }
 0x5ad   :  { %v2079_v22 = vpop.f32.mrf.mxu0 }
 0x5ae   :  { %v2085_v23 = vmax.f32 %v2079_v22, 0.0  ;;  %v5442_v22 = vld [vmem:[#allocation2 + $0x450] sm:$0xff]  }
 0x5af   :  { %4969 = vmatpush3.bf16.msra.mxu1 %v5657_v39  ;;  %v4944_v25 = vpop.f32.mrf.mxu0 }
 0x5b0   :  { %v2086_v26 = vpack.c.bf16 %v2085_v23, %v2085_v23  ;;  %4974 = vmatprep.subr.bf16.mxu1 %v5538_v0  ;;  %v5443_v23 = vld [vmem:[#allocation2 + $0x448] sm:$0xff]  }
 0x5b1   :  { %v2082_v27 = vpop.f32.mrf.mxu0 }
 0x5b2   :  { %4963 = vmatmul.mubr.bf16.vlgmr.msra.gmra.mxu0 %v2086_v26  ;;  %4971 = vmatmul.mubr.msk.bf16.vlgmr.msra.gmra.mxu1 %vm55_vm1, %v4145_v24  ;;  %v5444_v24 = vld [vmem:[#allocation2 + $0x440] sm:$0xff]  }
 0x5b3   :  { %4995 = vmatpush3.bf16.msra.mxu0 %v5910_v28  ;;  %4998 = vmatprep.mubr.msk.bf16.mxu0 %vm5539_vm0, %v5538_v0  ;;  %v4945_v39 = vpop.f32.mrf.mxu0 }
 0x5b4   :  { %4996 = vmatprep.subr.bf16.mxu0 %v5538_v0  ;;  %4975 = vmatpush3.bf16.msra.mxu1 %v5413_v37 }
 0x5b5   :  { %4976 = vmatprep.subr.bf16.mxu1 %v5538_v0  ;;  %4990 = vmatprep.mubr.msk.bf16.mxu1 %vm5539_vm0, %v5538_v0 }
 0x5b7   :  { %4997 = vmatpush3.bf16.msra.mxu0 %v5922_v30 }
 0x5b8   :  { %4977 = vmatpush3.bf16.msra.mxu1 %v5414_v29  ;;  %5002 = vmatprep.subr.bf16.mxu0 %v5538_v0 }
 0x5b9   :  { %4978 = vmatprep.subr.bf16.mxu1 %v5538_v0 }
 0x5ba   :  { %4999 = vmatmul.mubr.msk.bf16.vlgmr.msra.gmra.mxu0 %vm55_vm1, %v4155_v31 }
 0x5bb   :  { %5003 = vmatpush3.bf16.msra.mxu0 %v5416_v32  ;;  %5018 = vmatprep.mubr.msk.bf16.mxu0 %vm5539_vm0, %v5538_v0 }
 0x5bc   :  { %4979 = vmatpush3.bf16.msra.mxu1 %v5415_v33  ;;  %5004 = vmatprep.subr.bf16.mxu0 %v5538_v0 }
 0x5bd   :  { %4980 = vmatprep.subr.bf16.mxu1 %v5538_v0 }
 0x5bf   :  { %5005 = vmatpush3.bf16.msra.mxu0 %v5418_v34 }
 0x5c0   :  { %4981 = vmatpush3.bf16.msra.mxu1 %v5417_v35  ;;  %5006 = vmatprep.subr.bf16.mxu0 %v5538_v0 }
 0x5c1   :  { %4982 = vmatprep.subr.bf16.mxu1 %v5538_v0 }
 0x5c3   :  { %5007 = vmatpush3.bf16.msra.mxu0 %v5420_v36 }
 0x5c4   :  { %4983 = vmatpush3.bf16.msra.mxu1 %v5419_v38  ;;  %5008 = vmatprep.subr.bf16.mxu0 %v5538_v0 }
 0x5c5   :  { %4984 = vmatprep.subr.bf16.mxu1 %v5538_v0 }
 0x5c7   :  { %5009 = vmatpush3.bf16.msra.mxu0 %v5422_v41 }
 0x5c8   :  { %4985 = vmatpush3.bf16.msra.mxu1 %v5421_v40  ;;  %5010 = vmatprep.subr.bf16.mxu0 %v5538_v0 }
 0x5c9   :  { %4986 = vmatprep.subr.bf16.mxu1 %v5538_v0 }
 0x5cb   :  { %5011 = vmatpush3.bf16.msra.mxu0 %v5424_v43 }
 0x5cc   :  { %4987 = vmatpush3.bf16.msra.mxu1 %v5423_v42  ;;  %5012 = vmatprep.subr.bf16.mxu0 %v5538_v0 }
 0x5cd   :  { %4988 = vmatprep.subr.bf16.mxu1 %v5538_v0 }
 0x5cf   :  { %5013 = vmatpush3.bf16.msra.mxu0 %v5426_v45  ;;  %v4185_v45 = vld [vmem:[%s6184_s0 + $0x48] sm:$0xf] }
 0x5d0   :  { %4989 = vmatpush3.bf16.msra.mxu1 %v5425_v44  ;;  %5014 = vmatprep.subr.bf16.mxu0 %v5538_v0 }
 0x5d1   :  { %5022 = vmatprep.subr.bf16.mxu1 %v5538_v0 }
 0x5d3   :  { %5015 = vmatpush3.bf16.msra.mxu0 %v5427_v46 }
 0x5d4   :  { %5016 = vmatprep.subr.bf16.mxu0 %v5538_v0 }
 0x5d7   :  { %5017 = vmatpush3.bf16.msra.mxu0 %v5428_v47 }
 0x5d8   :  { %5050 = vmatprep.subr.bf16.mxu0 %v5538_v0 }
 0x66a   :  { %v2033_v48 = vpop.f32.mrf.mxu1 }
 0x66b   :  { %v2039_v49 = vadd.f32 %v2033_v48, %v5895_v13  ;;  %v5434_v13 = vld [vmem:[#allocation2 + $0x470] sm:$0xff]   ;;  %v5445_v48 = vld [vmem:[#allocation2 + $0x4b8] sm:$0xff]  }
 0x66c   :  { %v4936_v50 = vpop.f32.mrf.mxu1 }
 0x66e   :  { %v2036_v51 = vpop.f32.mrf.mxu1 }
 0x66f   :  { %v5446_v51 = vld [vmem:[#allocation2 + $0x4b0] sm:$0xff]  }
 0x670   :  { %v4937_v52 = vpop.f32.mrf.mxu1 }
 0x671   :  { %v4195_v52 = vld [vmem:[%s6184_s0 + $0x4c] sm:$0xf] }
 0x672   :  { %v2186_v53 = vpop.f32.mrf.mxu0  ;;  %v2232_v54 = vpop.f32.mrf.mxu1 }
 0x673   :  { %v5948_v55 = vadd.f32 %v2186_v53, %v2039_v49  ;;  %v2238_v56 = vmax.f32 %v2232_v54, 0.0  ;;  %v5448_v53 = vld [vmem:[#allocation2 + $0x4f8] sm:$0xff]   ;;  %v5447_v54 = vld [vmem:[#allocation2 + $0x4a8] sm:$0xff]  }
 0x674   :  { %v4964_v57 = vpop.f32.mrf.mxu0  ;;  %v4972_v58 = vpop.f32.mrf.mxu1 }
 0x675   :  { %v2239_v59 = vpack.c.bf16 %v2238_v56, %v2238_v56  ;;  %v5449_v56 = vld [vmem:[#allocation2 + $0x4a0] sm:$0xff]   ;;  %v5452_v57 = vld [vmem:[#allocation2 + $0x4e8] sm:$0xff]   ;;  %v5451_v58 = vld [vmem:[#allocation2 + $0x498] sm:$0xff]  }
 0x676   :  { %v2189_v60 = vpop.f32.mrf.mxu0  ;;  %v2235_v61 = vpop.f32.mrf.mxu1 }
 0x677   :  { %4991 = vmatmul.mubr.bf16.vlgmr.msra.gmra.mxu1 %v2239_v59  ;;  %v5453_v59 = vld [vmem:[#allocation2 + $0x490] sm:$0xff]   ;;  %v5454_v60 = vld [vmem:[#allocation2 + $0x4e0] sm:$0xff]   ;;  %v5455_v61 = vld [vmem:[#allocation2 + $0x488] sm:$0xff]  }
 0x678   :  { %5023 = vmatpush3.bf16.msra.mxu1 %v5910_v28  ;;  %v4965_v62 = vpop.f32.mrf.mxu0  ;;  %v4973_v63 = vpop.f32.mrf.mxu1  ;;  %5026 = vmatprep.mubr.msk.bf16.mxu1 %vm5539_vm0, %v5538_v0 }
 0x679   :  { %5024 = vmatprep.subr.bf16.mxu1 %v5538_v0  ;;  %v5456_v62 = vld [vmem:[#allocation2 + $0x4d8] sm:$0xff]   ;;  %v5457_v63 = vld [vmem:[#allocation2 + $0x480] sm:$0xff]  }
 0x67a   :  { %v2385_v1 = vpop.f32.mrf.mxu0 }
 0x67b   :  { %v2391_v2 = vmax.f32 %v2385_v1, 0.0  ;;  %v5458_v1 = vld [vmem:[#allocation2 + $0x4d0] sm:$0xff]  }
 0x67c   :  { %5025 = vmatpush3.bf16.msra.mxu1 %v5922_v30  ;;  %v5000_v4 = vpop.f32.mrf.mxu0 }
 0x67d   :  { %v2392_v5 = vpack.c.bf16 %v2391_v2, %v2391_v2  ;;  %5030 = vmatprep.subr.bf16.mxu1 %v5538_v0  ;;  %v5459_v2 = vld [vmem:[#allocation2 + $0x4c8] sm:$0xff]  }
 0x67e   :  { %v2388_v7 = vpop.f32.mrf.mxu0 }
 0x67f   :  { %5019 = vmatmul.mubr.bf16.vlgmr.msra.gmra.mxu0 %v2392_v5  ;;  %5027 = vmatmul.mubr.msk.bf16.vlgmr.msra.gmra.mxu1 %vm55_vm1, %v4165_v3  ;;  %v5460_v3 = vld [vmem:[#allocation2 + $0x4c0] sm:$0xff]  }
 0x680   :  { %5051 = vmatpush3.bf16.msra.mxu0 %v5910_v28  ;;  %5054 = vmatprep.mubr.msk.bf16.mxu0 %vm5539_vm0, %v5538_v0  ;;  %v5001_v8 = vpop.f32.mrf.mxu0 }
 0x681   :  { %5052 = vmatprep.subr.bf16.mxu0 %v5538_v0  ;;  %5031 = vmatpush3.bf16.msra.mxu1 %v5429_v6 }
 0x682   :  { %5032 = vmatprep.subr.bf16.mxu1 %v5538_v0  ;;  %5046 = vmatprep.mubr.msk.bf16.mxu1 %vm5539_vm0, %v5538_v0 }
 0x684   :  { %5053 = vmatpush3.bf16.msra.mxu0 %v5922_v30 }
 0x685   :  { %5033 = vmatpush3.bf16.msra.mxu1 %v5430_v9  ;;  %5058 = vmatprep.subr.bf16.mxu0 %v5538_v0 }
 0x686   :  { %5034 = vmatprep.subr.bf16.mxu1 %v5538_v0 }
 0x687   :  { %5055 = vmatmul.mubr.msk.bf16.vlgmr.msra.gmra.mxu0 %vm55_vm1, %v4175_v10 }
 0x688   :  { %5059 = vmatpush3.bf16.msra.mxu0 %v5432_v11  ;;  %5074 = vmatprep.mubr.msk.bf16.mxu0 %vm5539_vm0, %v5538_v0 }
 0x689   :  { %5035 = vmatpush3.bf16.msra.mxu1 %v5431_v12  ;;  %5060 = vmatprep.subr.bf16.mxu0 %v5538_v0 }
 0x68a   :  { %5036 = vmatprep.subr.bf16.mxu1 %v5538_v0 }
 0x68c   :  { %5061 = vmatpush3.bf16.msra.mxu0 %v5434_v13 }
 0x68d   :  { %5037 = vmatpush3.bf16.msra.mxu1 %v5433_v14  ;;  %5062 = vmatprep.subr.bf16.mxu0 %v5538_v0 }
 0x68e   :  { %5038 = vmatprep.subr.bf16.mxu1 %v5538_v0 }
 0x690   :  { %5063 = vmatpush3.bf16.msra.mxu0 %v5436_v15 }
 0x691   :  { %5039 = vmatpush3.bf16.msra.mxu1 %v5435_v16  ;;  %5064 = vmatprep.subr.bf16.mxu0 %v5538_v0 }
 0x692   :  { %5040 = vmatprep.subr.bf16.mxu1 %v5538_v0 }
 0x694   :  { %5065 = vmatpush3.bf16.msra.mxu0 %v5438_v18 }
 0x695   :  { %5041 = vmatpush3.bf16.msra.mxu1 %v5437_v17  ;;  %5066 = vmatprep.subr.bf16.mxu0 %v5538_v0 }
 0x696   :  { %5042 = vmatprep.subr.bf16.mxu1 %v5538_v0 }
 0x698   :  { %5067 = vmatpush3.bf16.msra.mxu0 %v5440_v20 }
 0x699   :  { %5043 = vmatpush3.bf16.msra.mxu1 %v5439_v19  ;;  %5068 = vmatprep.subr.bf16.mxu0 %v5538_v0 }
 0x69a   :  { %5044 = vmatprep.subr.bf16.mxu1 %v5538_v0 }
 0x69c   :  { %5069 = vmatpush3.bf16.msra.mxu0 %v5442_v22  ;;  %v4205_v22 = vld [vmem:[%s6184_s0 + $0x50] sm:$0xf] }
 0x69d   :  { %5045 = vmatpush3.bf16.msra.mxu1 %v5441_v21  ;;  %5070 = vmatprep.subr.bf16.mxu0 %v5538_v0 }
 0x69e   :  { %5078 = vmatprep.subr.bf16.mxu1 %v5538_v0 }
 0x6a0   :  { %5071 = vmatpush3.bf16.msra.mxu0 %v5443_v23 }
 0x6a1   :  { %5072 = vmatprep.subr.bf16.mxu0 %v5538_v0 }
 0x6a4   :  { %5073 = vmatpush3.bf16.msra.mxu0 %v5444_v24 }
 0x6a5   :  { %5106 = vmatprep.subr.bf16.mxu0 %v5538_v0 }
 0x737   :  { %v2339_v25 = vpop.f32.mrf.mxu1 }
 0x738   :  { %v2345_v26 = vadd.f32 %v2339_v25, %v5948_v55  ;;  %v5450_v55 = vld [vmem:[#allocation2 + $0x4f0] sm:$0xff]   ;;  %v5461_v25 = vld [vmem:[#allocation2 + $0x538] sm:$0xff]  }
 0x739   :  { %v4992_v37 = vpop.f32.mrf.mxu1 }
 0x73b   :  { %v2342_v27 = vpop.f32.mrf.mxu1 }
 0x73c   :  { %v5462_v27 = vld [vmem:[#allocation2 + $0x530] sm:$0xff]  }
 0x73d   :  { %v4993_v39 = vpop.f32.mrf.mxu1 }
 0x73e   :  { %v4215_v39 = vld [vmem:[%s6184_s0 + $0x54] sm:$0xf] }
 0x73f   :  { %v2492_v29 = vpop.f32.mrf.mxu0  ;;  %v2538_v31 = vpop.f32.mrf.mxu1 }
 0x740   :  { %v5991_v32 = vadd.f32 %v2492_v29, %v2345_v26  ;;  %v2544_v33 = vmax.f32 %v2538_v31, 0.0  ;;  %v5464_v29 = vld [vmem:[#allocation2 + $0x578] sm:$0xff]   ;;  %v5463_v31 = vld [vmem:[#allocation2 + $0x528] sm:$0xff]  }
 0x741   :  { %v5020_v34 = vpop.f32.mrf.mxu0  ;;  %v5028_v35 = vpop.f32.mrf.mxu1 }
 0x742   :  { %v2545_v36 = vpack.c.bf16 %v2544_v33, %v2544_v33  ;;  %v5465_v33 = vld [vmem:[#allocation2 + $0x520] sm:$0xff]   ;;  %v5468_v34 = vld [vmem:[#allocation2 + $0x568] sm:$0xff]   ;;  %v5467_v35 = vld [vmem:[#allocation2 + $0x518] sm:$0xff]  }
 0x743   :  { %v2495_v38 = vpop.f32.mrf.mxu0  ;;  %v2541_v40 = vpop.f32.mrf.mxu1 }
 0x744   :  { %5047 = vmatmul.mubr.bf16.vlgmr.msra.gmra.mxu1 %v2545_v36  ;;  %v5469_v36 = vld [vmem:[#allocation2 + $0x510] sm:$0xff]   ;;  %v5470_v38 = vld [vmem:[#allocation2 + $0x560] sm:$0xff]   ;;  %v5471_v40 = vld [vmem:[#allocation2 + $0x508] sm:$0xff]  }
 0x745   :  { %5079 = vmatpush3.bf16.msra.mxu1 %v5910_v28  ;;  %v5021_v41 = vpop.f32.mrf.mxu0  ;;  %v5029_v42 = vpop.f32.mrf.mxu1  ;;  %5082 = vmatprep.mubr.msk.bf16.mxu1 %vm5539_vm0, %v5538_v0 }
 0x746   :  { %5080 = vmatprep.subr.bf16.mxu1 %v5538_v0  ;;  %v5472_v41 = vld [vmem:[#allocation2 + $0x558] sm:$0xff]   ;;  %v5473_v42 = vld [vmem:[#allocation2 + $0x500] sm:$0xff]  }
 0x747   :  { %v2691_v43 = vpop.f32.mrf.mxu0 }
 0x748   :  { %v2697_v44 = vmax.f32 %v2691_v43, 0.0  ;;  %v5474_v43 = vld [vmem:[#allocation2 + $0x550] sm:$0xff]  }
 0x749   :  { %5081 = vmatpush3.bf16.msra.mxu1 %v5922_v30  ;;  %v5056_v46 = vpop.f32.mrf.mxu0 }
 0x74a   :  { %v2698_v47 = vpack.c.bf16 %v2697_v44, %v2697_v44  ;;  %5086 = vmatprep.subr.bf16.mxu1 %v5538_v0  ;;  %v5475_v44 = vld [vmem:[#allocation2 + $0x548] sm:$0xff]  }
 0x74b   :  { %v2694_v49 = vpop.f32.mrf.mxu0 }
 0x74c   :  { %5075 = vmatmul.mubr.bf16.vlgmr.msra.gmra.mxu0 %v2698_v47  ;;  %5083 = vmatmul.mubr.msk.bf16.vlgmr.msra.gmra.mxu1 %vm55_vm1, %v4185_v45  ;;  %v5476_v45 = vld [vmem:[#allocation2 + $0x540] sm:$0xff]  }
 0x74d   :  { %5107 = vmatpush3.bf16.msra.mxu0 %v5910_v28  ;;  %5110 = vmatprep.mubr.msk.bf16.mxu0 %vm5539_vm0, %v5538_v0  ;;  %v5057_v50 = vpop.f32.mrf.mxu0 }
 0x74e   :  { %5108 = vmatprep.subr.bf16.mxu0 %v5538_v0  ;;  %5087 = vmatpush3.bf16.msra.mxu1 %v5445_v48 }
 0x74f   :  { %5088 = vmatprep.subr.bf16.mxu1 %v5538_v0  ;;  %5102 = vmatprep.mubr.msk.bf16.mxu1 %vm5539_vm0, %v5538_v0 }
 0x751   :  { %5109 = vmatpush3.bf16.msra.mxu0 %v5922_v30 }
 0x752   :  { %5089 = vmatpush3.bf16.msra.mxu1 %v5446_v51  ;;  %5114 = vmatprep.subr.bf16.mxu0 %v5538_v0 }
 0x753   :  { %5090 = vmatprep.subr.bf16.mxu1 %v5538_v0 }
 0x754   :  { %5111 = vmatmul.mubr.msk.bf16.vlgmr.msra.gmra.mxu0 %vm55_vm1, %v4195_v52 }
 0x755   :  { %5115 = vmatpush3.bf16.msra.mxu0 %v5448_v53  ;;  %5130 = vmatprep.mubr.msk.bf16.mxu0 %vm5539_vm0, %v5538_v0 }
 0x756   :  { %5091 = vmatpush3.bf16.msra.mxu1 %v5447_v54  ;;  %5116 = vmatprep.subr.bf16.mxu0 %v5538_v0 }
 0x757   :  { %5092 = vmatprep.subr.bf16.mxu1 %v5538_v0 }
 0x759   :  { %5117 = vmatpush3.bf16.msra.mxu0 %v5450_v55 }
 0x75a   :  { %5093 = vmatpush3.bf16.msra.mxu1 %v5449_v56  ;;  %5118 = vmatprep.subr.bf16.mxu0 %v5538_v0 }
 0x75b   :  { %5094 = vmatprep.subr.bf16.mxu1 %v5538_v0 }
 0x75d   :  { %5119 = vmatpush3.bf16.msra.mxu0 %v5452_v57 }
 0x75e   :  { %5095 = vmatpush3.bf16.msra.mxu1 %v5451_v58  ;;  %5120 = vmatprep.subr.bf16.mxu0 %v5538_v0 }
 0x75f   :  { %5096 = vmatprep.subr.bf16.mxu1 %v5538_v0 }
 0x761   :  { %5121 = vmatpush3.bf16.msra.mxu0 %v5454_v60 }
 0x762   :  { %5097 = vmatpush3.bf16.msra.mxu1 %v5453_v59  ;;  %5122 = vmatprep.subr.bf16.mxu0 %v5538_v0 }
 0x763   :  { %5098 = vmatprep.subr.bf16.mxu1 %v5538_v0 }
 0x765   :  { %5123 = vmatpush3.bf16.msra.mxu0 %v5456_v62 }
 0x766   :  { %5099 = vmatpush3.bf16.msra.mxu1 %v5455_v61  ;;  %5124 = vmatprep.subr.bf16.mxu0 %v5538_v0 }
 0x767   :  { %5100 = vmatprep.subr.bf16.mxu1 %v5538_v0 }
 0x769   :  { %5125 = vmatpush3.bf16.msra.mxu0 %v5458_v1  ;;  %v4225_v1 = vld [vmem:[%s6184_s0 + $0x58] sm:$0xf] }
 0x76a   :  { %5101 = vmatpush3.bf16.msra.mxu1 %v5457_v63  ;;  %5126 = vmatprep.subr.bf16.mxu0 %v5538_v0 }
 0x76b   :  { %5134 = vmatprep.subr.bf16.mxu1 %v5538_v0 }
 0x76d   :  { %5127 = vmatpush3.bf16.msra.mxu0 %v5459_v2 }
 0x76e   :  { %5128 = vmatprep.subr.bf16.mxu0 %v5538_v0 }
 0x771   :  { %5129 = vmatpush3.bf16.msra.mxu0 %v5460_v3 }
 0x772   :  { %5162 = vmatprep.subr.bf16.mxu0 %v5538_v0 }
 0x804   :  { %v2645_v4 = vpop.f32.mrf.mxu1 }
 0x805   :  { %v2651_v5 = vadd.f32 %v2645_v4, %v5991_v32  ;;  %v5466_v32 = vld [vmem:[#allocation2 + $0x570] sm:$0xff]   ;;  %v5477_v4 = vld [vmem:[#allocation2 + $0x5b8] sm:$0xff]  }
 0x806   :  { %v5048_v6 = vpop.f32.mrf.mxu1 }
 0x808   :  { %v2648_v7 = vpop.f32.mrf.mxu1 }
 0x809   :  { %v5478_v7 = vld [vmem:[#allocation2 + $0x5b0] sm:$0xff]  }
 0x80a   :  { %v5049_v8 = vpop.f32.mrf.mxu1 }
 0x80b   :  { %v4235_v8 = vld [vmem:[%s6184_s0 + $0x5c] sm:$0xf] }
 0x80c   :  { %v2798_v9 = vpop.f32.mrf.mxu0  ;;  %v2844_v10 = vpop.f32.mrf.mxu1 }
 0x80d   :  { %v6034_v11 = vadd.f32 %v2798_v9, %v2651_v5  ;;  %v2850_v12 = vmax.f32 %v2844_v10, 0.0  ;;  %v5480_v9 = vld [vmem:[#allocation2 + $0x5f8] sm:$0xff]   ;;  %v5479_v10 = vld [vmem:[#allocation2 + $0x5a8] sm:$0xff]  }
 0x80e   :  { %v5076_v13 = vpop.f32.mrf.mxu0  ;;  %v5084_v14 = vpop.f32.mrf.mxu1 }
 0x80f   :  { %v2851_v15 = vpack.c.bf16 %v2850_v12, %v2850_v12  ;;  %v5481_v12 = vld [vmem:[#allocation2 + $0x5a0] sm:$0xff]   ;;  %v5484_v13 = vld [vmem:[#allocation2 + $0x5e8] sm:$0xff]   ;;  %v5483_v14 = vld [vmem:[#allocation2 + $0x598] sm:$0xff]  }
 0x810   :  { %v2801_v16 = vpop.f32.mrf.mxu0  ;;  %v2847_v17 = vpop.f32.mrf.mxu1 }
 0x811   :  { %5103 = vmatmul.mubr.bf16.vlgmr.msra.gmra.mxu1 %v2851_v15  ;;  %v5485_v15 = vld [vmem:[#allocation2 + $0x590] sm:$0xff]   ;;  %v5486_v16 = vld [vmem:[#allocation2 + $0x5e0] sm:$0xff]   ;;  %v5487_v17 = vld [vmem:[#allocation2 + $0x588] sm:$0xff]  }
 0x812   :  { %5135 = vmatpush3.bf16.msra.mxu1 %v5910_v28  ;;  %v5077_v18 = vpop.f32.mrf.mxu0  ;;  %v5085_v19 = vpop.f32.mrf.mxu1  ;;  %5138 = vmatprep.mubr.msk.bf16.mxu1 %vm5539_vm0, %v5538_v0 }
 0x813   :  { %5136 = vmatprep.subr.bf16.mxu1 %v5538_v0  ;;  %v5488_v18 = vld [vmem:[#allocation2 + $0x5d8] sm:$0xff]   ;;  %v5489_v19 = vld [vmem:[#allocation2 + $0x580] sm:$0xff]  }
 0x814   :  { %v2997_v20 = vpop.f32.mrf.mxu0 }
 0x815   :  { %v3003_v21 = vmax.f32 %v2997_v20, 0.0  ;;  %v5490_v20 = vld [vmem:[#allocation2 + $0x5d0] sm:$0xff]  }
 0x816   :  { %5137 = vmatpush3.bf16.msra.mxu1 %v5922_v30  ;;  %v5112_v23 = vpop.f32.mrf.mxu0 }
 0x817   :  { %v3004_v24 = vpack.c.bf16 %v3003_v21, %v3003_v21  ;;  %5142 = vmatprep.subr.bf16.mxu1 %v5538_v0  ;;  %v5491_v21 = vld [vmem:[#allocation2 + $0x5c8] sm:$0xff]  }
 0x818   :  { %v3000_v26 = vpop.f32.mrf.mxu0 }
 0x819   :  { %5131 = vmatmul.mubr.bf16.vlgmr.msra.gmra.mxu0 %v3004_v24  ;;  %5139 = vmatmul.mubr.msk.bf16.vlgmr.msra.gmra.mxu1 %vm55_vm1, %v4205_v22  ;;  %v5492_v22 = vld [vmem:[#allocation2 + $0x5c0] sm:$0xff]  }
 0x81a   :  { %5163 = vmatpush3.bf16.msra.mxu0 %v5910_v28  ;;  %5166 = vmatprep.mubr.msk.bf16.mxu0 %vm5539_vm0, %v5538_v0  ;;  %v5113_v37 = vpop.f32.mrf.mxu0 }
 0x81b   :  { %5164 = vmatprep.subr.bf16.mxu0 %v5538_v0  ;;  %5143 = vmatpush3.bf16.msra.mxu1 %v5461_v25 }
 0x81c   :  { %5144 = vmatprep.subr.bf16.mxu1 %v5538_v0  ;;  %5158 = vmatprep.mubr.msk.bf16.mxu1 %vm5539_vm0, %v5538_v0 }
 0x81e   :  { %5165 = vmatpush3.bf16.msra.mxu0 %v5922_v30 }
 0x81f   :  { %5145 = vmatpush3.bf16.msra.mxu1 %v5462_v27  ;;  %5170 = vmatprep.subr.bf16.mxu0 %v5538_v0 }
 0x820   :  { %5146 = vmatprep.subr.bf16.mxu1 %v5538_v0 }
 0x821   :  { %5167 = vmatmul.mubr.msk.bf16.vlgmr.msra.gmra.mxu0 %vm55_vm1, %v4215_v39 }
 0x822   :  { %5171 = vmatpush3.bf16.msra.mxu0 %v5464_v29  ;;  %5186 = vmatprep.mubr.msk.bf16.mxu0 %vm5539_vm0, %v5538_v0 }
 0x823   :  { %5147 = vmatpush3.bf16.msra.mxu1 %v5463_v31  ;;  %5172 = vmatprep.subr.bf16.mxu0 %v5538_v0 }
 0x824   :  { %5148 = vmatprep.subr.bf16.mxu1 %v5538_v0 }
 0x826   :  { %5173 = vmatpush3.bf16.msra.mxu0 %v5466_v32 }
 0x827   :  { %5149 = vmatpush3.bf16.msra.mxu1 %v5465_v33  ;;  %5174 = vmatprep.subr.bf16.mxu0 %v5538_v0 }
 0x828   :  { %5150 = vmatprep.subr.bf16.mxu1 %v5538_v0 }
 0x82a   :  { %5175 = vmatpush3.bf16.msra.mxu0 %v5468_v34 }
 0x82b   :  { %5151 = vmatpush3.bf16.msra.mxu1 %v5467_v35  ;;  %5176 = vmatprep.subr.bf16.mxu0 %v5538_v0 }
 0x82c   :  { %5152 = vmatprep.subr.bf16.mxu1 %v5538_v0 }
 0x82e   :  { %5177 = vmatpush3.bf16.msra.mxu0 %v5470_v38 }
 0x82f   :  { %5153 = vmatpush3.bf16.msra.mxu1 %v5469_v36  ;;  %5178 = vmatprep.subr.bf16.mxu0 %v5538_v0 }
 0x830   :  { %5154 = vmatprep.subr.bf16.mxu1 %v5538_v0 }
 0x832   :  { %5179 = vmatpush3.bf16.msra.mxu0 %v5472_v41 }
 0x833   :  { %5155 = vmatpush3.bf16.msra.mxu1 %v5471_v40  ;;  %5180 = vmatprep.subr.bf16.mxu0 %v5538_v0 }
 0x834   :  { %5156 = vmatprep.subr.bf16.mxu1 %v5538_v0 }
 0x836   :  { %5181 = vmatpush3.bf16.msra.mxu0 %v5474_v43  ;;  %v4245_v43 = vld [vmem:[%s6184_s0 + $0x60] sm:$0xf] }
 0x837   :  { %5157 = vmatpush3.bf16.msra.mxu1 %v5473_v42  ;;  %5182 = vmatprep.subr.bf16.mxu0 %v5538_v0 }
 0x838   :  { %5190 = vmatprep.subr.bf16.mxu1 %v5538_v0 }
 0x83a   :  { %5183 = vmatpush3.bf16.msra.mxu0 %v5475_v44  ;;  %v5493_v44 = vld [vmem:[#allocation2 + $0x638] sm:$0xff]  }
 0x83b   :  { %5184 = vmatprep.subr.bf16.mxu0 %v5538_v0 }
 0x83e   :  { %5185 = vmatpush3.bf16.msra.mxu0 %v5476_v45 }
 0x83f   :  { %5218 = vmatprep.subr.bf16.mxu0 %v5538_v0 }
 0x8d1   :  { %v2951_v46 = vpop.f32.mrf.mxu1 }
 0x8d2   :  { %v2957_v47 = vadd.f32 %v2951_v46, %v6034_v11  ;;  %v5482_v11 = vld [vmem:[#allocation2 + $0x5f0] sm:$0xff]  }
 0x8d3   :  { %v5104_v48 = vpop.f32.mrf.mxu1 }
 0x8d5   :  { %v2954_v49 = vpop.f32.mrf.mxu1 }
 0x8d6   :  { %v5496_v49 = vld [vmem:[#allocation2 + $0x620] sm:$0xff]  }
 0x8d7   :  { %v5105_v50 = vpop.f32.mrf.mxu1 }
 0x8d8   :  { %v5497_v50 = vld [vmem:[#allocation2 + $0x618] sm:$0xff]  }
 0x8d9   :  { %v3104_v51 = vpop.f32.mrf.mxu0  ;;  %v3150_v52 = vpop.f32.mrf.mxu1 }
 0x8da   :  { %v6077_v53 = vadd.f32 %v3104_v51, %v2957_v47  ;;  %v3156_v54 = vmax.f32 %v3150_v52, 0.0  ;;  %v5494_v47 = vld [vmem:[#allocation2 + $0x630] sm:$0xff]   ;;  %v5499_v52 = vld [vmem:[#allocation2 + $0x608] sm:$0xff]  }
 0x8db   :  { %v5132_v55 = vpop.f32.mrf.mxu0  ;;  %v5140_v56 = vpop.f32.mrf.mxu1  ;;  %v5498_v51 = vld [vmem:[#allocation2 + $0x610] sm:$0xff]  }
 0x8dc   :  { %v3157_v57 = vpack.c.bf16 %v3156_v54, %v3156_v54  ;;  %v5501_v54 = vld [vmem:[%s6188_s4 + $0x38] sm:$0xff]   ;;  %v5502_v55 = vld [vmem:[%s6188_s4 + $0x30] sm:$0xff]   ;;  %v5503_v56 = vld [vmem:[%s6188_s4 + $0x28] sm:$0xff]  }
 0x8dd   :  { %v3107_v58 = vpop.f32.mrf.mxu0  ;;  %v3153_v59 = vpop.f32.mrf.mxu1 }
 0x8de   :  { %5159 = vmatmul.mubr.bf16.vlgmr.msra.gmra.mxu1 %v3157_v57  ;;  %v5504_v57 = vld [vmem:[%s6188_s4 + $0x20] sm:$0xff]   ;;  %v5505_v58 = vld [vmem:[%s6188_s4 + $0x18] sm:$0xff]   ;;  %v5506_v59 = vld [vmem:[%s6188_s4 + $0x10] sm:$0xff]  }
 0x8df   :  { %5191 = vmatpush3.bf16.msra.mxu1 %v5910_v28  ;;  %v5133_v60 = vpop.f32.mrf.mxu0  ;;  %v5141_v61 = vpop.f32.mrf.mxu1  ;;  %5194 = vmatprep.mubr.msk.bf16.mxu1 %vm5539_vm0, %v5538_v0 }
 0x8e0   :  { %5192 = vmatprep.subr.bf16.mxu1 %v5538_v0 }
 0x8e1   :  { %v3303_v62 = vpop.f32.mrf.mxu0 }
 0x8e2   :  { %v3309_v63 = vmax.f32 %v3303_v62, 0.0 }
 0x8e3   :  { %5193 = vmatpush3.bf16.msra.mxu1 %v5922_v30  ;;  %v5168_v2 = vpop.f32.mrf.mxu0 }
 0x8e4   :  { %v3310_v3 = vpack.c.bf16 %v3309_v63, %v3309_v63  ;;  %5198 = vmatprep.subr.bf16.mxu1 %v5538_v0 }
 0x8e5   :  { %v3306_v5 = vpop.f32.mrf.mxu0 }
 0x8e6   :  { %5187 = vmatmul.mubr.bf16.vlgmr.msra.gmra.mxu0 %v3310_v3  ;;  %5195 = vmatmul.mubr.msk.bf16.vlgmr.msra.gmra.mxu1 %vm55_vm1, %v4225_v1 }
 0x8e7   :  { %5219 = vmatpush3.bf16.msra.mxu0 %v5910_v28  ;;  %5222 = vmatprep.mubr.msk.bf16.mxu0 %vm5539_vm0, %v5538_v0  ;;  %v5169_v6 = vpop.f32.mrf.mxu0 }
 0x8e8   :  { %5220 = vmatprep.subr.bf16.mxu0 %v5538_v0  ;;  %5199 = vmatpush3.bf16.msra.mxu1 %v5477_v4 }
 0x8e9   :  { %5200 = vmatprep.subr.bf16.mxu1 %v5538_v0  ;;  %5214 = vmatprep.mubr.msk.bf16.mxu1 %vm5539_vm0, %v5538_v0 }
 0x8eb   :  { %5221 = vmatpush3.bf16.msra.mxu0 %v5922_v30 }
 0x8ec   :  { %5201 = vmatpush3.bf16.msra.mxu1 %v5478_v7  ;;  %5226 = vmatprep.subr.bf16.mxu0 %v5538_v0 }
 0x8ed   :  { %5202 = vmatprep.subr.bf16.mxu1 %v5538_v0 }
 0x8ee   :  { %5223 = vmatmul.mubr.msk.bf16.vlgmr.msra.gmra.mxu0 %vm55_vm1, %v4235_v8 }
 0x8ef   :  { %5227 = vmatpush3.bf16.msra.mxu0 %v5480_v9  ;;  %5242 = vmatprep.mubr.msk.bf16.mxu0 %vm5539_vm0, %v5538_v0 }
 0x8f0   :  { %5203 = vmatpush3.bf16.msra.mxu1 %v5479_v10  ;;  %5228 = vmatprep.subr.bf16.mxu0 %v5538_v0 }
 0x8f1   :  { %5204 = vmatprep.subr.bf16.mxu1 %v5538_v0 }
 0x8f3   :  { %5229 = vmatpush3.bf16.msra.mxu0 %v5482_v11 }
 0x8f4   :  { %5205 = vmatpush3.bf16.msra.mxu1 %v5481_v12  ;;  %5230 = vmatprep.subr.bf16.mxu0 %v5538_v0 }
 0x8f5   :  { %5206 = vmatprep.subr.bf16.mxu1 %v5538_v0 }
 0x8f7   :  { %5231 = vmatpush3.bf16.msra.mxu0 %v5484_v13  ;;  %v5507_v13 = vld [vmem:[%s6188_s4 + $0x8] sm:$0xff]  }
 0x8f8   :  { %5207 = vmatpush3.bf16.msra.mxu1 %v5483_v14  ;;  %5232 = vmatprep.subr.bf16.mxu0 %v5538_v0  ;;  %v5508_v14 = vld [vmem:[%s6188_s4] sm:$0xff]  }
 0x8f9   :  { %5208 = vmatprep.subr.bf16.mxu1 %v5538_v0 }
 0x8fb   :  { %5233 = vmatpush3.bf16.msra.mxu0 %v5486_v16  ;;  %v4255_v16 = vld [vmem:[%s6187_s3] ss:$0 sm:$0xff] }
 0x8fc   :  { %5209 = vmatpush3.bf16.msra.mxu1 %v5485_v15  ;;  %5234 = vmatprep.subr.bf16.mxu0 %v5538_v0 }
 0x8fd   :  { %5210 = vmatprep.subr.bf16.mxu1 %v5538_v0 }
 0x8ff   :  { %5235 = vmatpush3.bf16.msra.mxu0 %v5488_v18 }
 0x900   :  { %5211 = vmatpush3.bf16.msra.mxu1 %v5487_v17  ;;  %5236 = vmatprep.subr.bf16.mxu0 %v5538_v0 }
 0x901   :  { %5212 = vmatprep.subr.bf16.mxu1 %v5538_v0 }
 0x903   :  { %5237 = vmatpush3.bf16.msra.mxu0 %v5490_v20 }
 0x904   :  { %5213 = vmatpush3.bf16.msra.mxu1 %v5489_v19  ;;  %5238 = vmatprep.subr.bf16.mxu0 %v5538_v0 }
 0x905   :  { %5246 = vmatprep.subr.bf16.mxu1 %v5538_v0 }
 0x907   :  { %5239 = vmatpush3.bf16.msra.mxu0 %v5491_v21 }
 0x908   :  { %5240 = vmatprep.subr.bf16.mxu0 %v5538_v0 }
 0x90b   :  { %5241 = vmatpush3.bf16.msra.mxu0 %v5492_v22 }
 0x90c   :  { %5274 = vmatprep.subr.bf16.mxu0 %v5538_v0 }
 0x99e   :  { %v3257_v23 = vpop.f32.mrf.mxu1 }
 0x99f   :  { %v3263_v24 = vadd.f32 %v3257_v23, %v6077_v53  ;;  %v5500_v53 = vld [vmem:[#allocation2 + $0x600] sm:$0xff]  }
 0x9a0   :  { %v5160_v25 = vpop.f32.mrf.mxu1 }
 0x9a2   :  { %v3260_v26 = vpop.f32.mrf.mxu1 }
 0x9a4   :  { %v5161_v37 = vpop.f32.mrf.mxu1 }
 0x9a6   :  { %v3410_v27 = vpop.f32.mrf.mxu0  ;;  %v3456_v39 = vpop.f32.mrf.mxu1 }
 0x9a7   :  { %v6120_v29 = vadd.f32 %v3410_v27, %v3263_v24  ;;  %v3462_v31 = vmax.f32 %v3456_v39, 0.0 }
 0x9a8   :  { %v5188_v32 = vpop.f32.mrf.mxu0  ;;  %v5196_v33 = vpop.f32.mrf.mxu1 }
 0x9a9   :  { %v3463_v34 = vpack.c.bf16 %v3462_v31, %v3462_v31 }
 0x9aa   :  { %v3413_v35 = vpop.f32.mrf.mxu0  ;;  %v3459_v36 = vpop.f32.mrf.mxu1 }
 0x9ab   :  { %5215 = vmatmul.mubr.bf16.vlgmr.msra.gmra.mxu1 %v3463_v34 }
 0x9ac   :  { %5247 = vmatpush3.bf16.msra.mxu1 %v5910_v28  ;;  %v5189_v38 = vpop.f32.mrf.mxu0  ;;  %v5197_v40 = vpop.f32.mrf.mxu1  ;;  %5250 = vmatprep.mubr.msk.bf16.mxu1 %vm5539_vm0, %v5538_v0 }
 0x9ad   :  { %5248 = vmatprep.subr.bf16.mxu1 %v5538_v0 }
 0x9ae   :  { %v3609_v41 = vpop.f32.mrf.mxu0 }
 0x9af   :  { %v3615_v42 = vmax.f32 %v3609_v41, 0.0 }
 0x9b0   :  { %5249 = vmatpush3.bf16.msra.mxu1 %v5922_v30  ;;  %v5224_v45 = vpop.f32.mrf.mxu0  ;;  %v5495_v30 = vld [vmem:[#allocation2 + $0x628] sm:$0xff]  }
 0x9b1   :  { %v3616_v46 = vpack.c.bf16 %v3615_v42, %v3615_v42  ;;  %5254 = vmatprep.subr.bf16.mxu1 %v5538_v0 }
 0x9b2   :  { %v3612_v28 = vpop.f32.mrf.mxu0 }
 0x9b3   :  { %5243 = vmatmul.mubr.bf16.vlgmr.msra.gmra.mxu0 %v3616_v46  ;;  %5251 = vmatmul.mubr.msk.bf16.vlgmr.msra.gmra.mxu1 %vm55_vm1, %v4245_v43 }
 0x9b4   :  { %5255 = vmatpush3.bf16.msra.mxu1 %v5493_v44  ;;  %v5225_v48 = vpop.f32.mrf.mxu0  ;;  %5270 = vmatprep.mubr.msk.bf16.mxu1 %vm5539_vm0, %v5538_v0 }
 0x9b5   :  { %5256 = vmatprep.subr.bf16.mxu1 %v5538_v0  ;;  %5290 = vmatprep.mubr.msk.bf16.mxu0 %vm5539_vm0, %v5538_v0 }
 0x9b6   :  { %5275 = vmatpush3.bf16.msra.mxu0 %v5501_v54 }
 0x9b7   :  { %5276 = vmatprep.subr.bf16.mxu0 %v5538_v0 }
 0x9b8   :  { %5257 = vmatpush3.bf16.msra.mxu1 %v5494_v47 }
 0x9b9   :  { %5258 = vmatprep.subr.bf16.mxu1 %v5538_v0 }
 0x9ba   :  { %5277 = vmatpush3.bf16.msra.mxu0 %v5502_v55 }
 0x9bb   :  { %5278 = vmatprep.subr.bf16.mxu0 %v5538_v0 }
 0x9bc   :  { %5259 = vmatpush3.bf16.msra.mxu1 %v5495_v30 }
 0x9bd   :  { %5260 = vmatprep.subr.bf16.mxu1 %v5538_v0 }
 0x9be   :  { %5279 = vmatpush3.bf16.msra.mxu0 %v5503_v56 }
 0x9bf   :  { %5280 = vmatprep.subr.bf16.mxu0 %v5538_v0 }
 0x9c0   :  { %5261 = vmatpush3.bf16.msra.mxu1 %v5496_v49 }
 0x9c1   :  { %5262 = vmatprep.subr.bf16.mxu1 %v5538_v0 }
 0x9c2   :  { %5281 = vmatpush3.bf16.msra.mxu0 %v5504_v57 }
 0x9c3   :  { %5282 = vmatprep.subr.bf16.mxu0 %v5538_v0 }
 0x9c4   :  { %5263 = vmatpush3.bf16.msra.mxu1 %v5497_v50 }
 0x9c5   :  { %5264 = vmatprep.subr.bf16.mxu1 %v5538_v0 }
 0x9c6   :  { %5283 = vmatpush3.bf16.msra.mxu0 %v5505_v58 }
 0x9c7   :  { %5284 = vmatprep.subr.bf16.mxu0 %v5538_v0 }
 0x9c8   :  { %5265 = vmatpush3.bf16.msra.mxu1 %v5498_v51 }
 0x9c9   :  { %5266 = vmatprep.subr.bf16.mxu1 %v5538_v0 }
 0x9ca   :  { %5285 = vmatpush3.bf16.msra.mxu0 %v5506_v59 }
 0x9cb   :  { %5286 = vmatprep.subr.bf16.mxu0 %v5538_v0 }
 0x9cc   :  { %5267 = vmatpush3.bf16.msra.mxu1 %v5499_v52 }
 0x9cd   :  { %5268 = vmatprep.subr.bf16.mxu1 %v5538_v0 }
 0x9ce   :  { %5287 = vmatpush3.bf16.msra.mxu0 %v5507_v13 }
 0x9cf   :  { %5288 = vmatprep.subr.bf16.mxu0 %v5538_v0  ;;  %v4256_v0 = vld [vmem:[%s6189_s5] ss:$0 sm:$0xff] }
 0x9d0   :  { %5269 = vmatpush3.bf16.msra.mxu1 %v5500_v53 }
 0x9d2   :  { %5289 = vmatpush3.bf16.msra.mxu0 %v5508_v14 }
 0xa6b   :  { %v3563_v60 = vpop.f32.mrf.mxu1 }
 0xa6c   :  { %v3569_v61 = vadd.f32 %v3563_v60, %v6120_v29 }
 0xa6d   :  { %v5216_v62 = vpop.f32.mrf.mxu1 }
 0xa6f   :  { %v3566_v63 = vpop.f32.mrf.mxu1 }
 0xa71   :  { %v5217_v1 = vpop.f32.mrf.mxu1 }
 0xa73   :  { %v3716_v2 = vpop.f32.mrf.mxu0  ;;  %v3762_v3 = vpop.f32.mrf.mxu1 }
 0xa74   :  { %v3722_v4 = vadd.f32 %v3716_v2, %v3569_v61  ;;  %v3768_v5 = vmax.f32 %v3762_v3, 0.0 }
 0xa75   :  { %v5252_v6 = vpop.f32.mrf.mxu1  ;;  %v5244_v7 = vpop.f32.mrf.mxu0 }
 0xa76   :  { %v3769_v8 = vpack.c.bf16 %v3768_v5, %v3768_v5 }
 0xa77   :  { %v3765_v9 = vpop.f32.mrf.mxu1  ;;  %v3719_v10 = vpop.f32.mrf.mxu0 }
 0xa78   :  { %5271 = vmatmul.mubr.bf16.vlgmr.msra.gmra.mxu1 %v3769_v8 }
 0xa79   :  { %v5253_v11 = vpop.f32.mrf.mxu1  ;;  %v5245_v12 = vpop.f32.mrf.mxu0 }
 0xb38   :  { %v3869_v15 = vpop.f32.mrf.mxu1 }
 0xb39   :  { %v3875_v17 = vadd.f32 %v3869_v15, %v3722_v4 }
 0xb3a   :  { %v5272_v18 = vpop.f32.mrf.mxu1 }
 0xb3b   :  { %v3883_v19 = vadd.f32 %v4255_v16, %v3875_v17 }
 0xb3c   :  { %v3872_v20 = vpop.f32.mrf.mxu1 }
 0xb3d   :  { %v3884_v21 = vmax.f32 %v3883_v19, 0.0 }
 0xb3e   :  { %v5273_v22 = vpop.f32.mrf.mxu1 }
 0xb3f   :  { %v3885_v23 = vpack.c.bf16 %v3884_v21, %v3884_v21 }
 0xb41   :  { %5291 = vmatmul.mubr.bf16.vlgmr.msra.gmra.mxu0 %v3885_v23 }
 0xc01   :  { %v3991_v24 = vpop.f32.mrf.mxu0 }
 0xc02   :  { %v3992_v25 = vadd.f32 %v4256_v0, %v3991_v24 }
 0xc03   :  { %v5292_v26 = vpop.f32.mrf.mxu0 }
 0xc04   :  { %v3997_v37 = vpack.c.bf16 %v3992_v25, %v3992_v25 }
 0xc05   :  { %v3994_v27 = vpop.f32.mrf.mxu0 }
 0xc06   :  { %3998 = vst [vmem:[%s6190_s6] sm:$0xf] %v3997_v37 }
 0xc07   :  { %v5293_v39 = vpop.f32.mrf.mxu0 }
 0xc08   :  { %4003 = vsyncpa [#allocation3], 1 }

</bundles_post_ra>
